<compile_context>
chip_gen: v7x
topology: tpu7x:2x2x1
jax: 0.10.0
libtpu: 0.0.40
codegen_flags: <defaults>
</compile_context>

<pallas_src>
import math
from functools import partial

import jax
import jax.numpy as jnp
from jax import lax
from jax.experimental import pallas as pl
from jax.experimental.pallas import tpu as pltpu

# ----------------------- problem sizes (small, synthetic) -------------------
D_MODEL = 32
NHEAD = 4
DIM_FF = 64
T = 8        # target sequence length
S = 16       # memory sequence length
B = 2        # batch
HEAD_DIM = D_MODEL // NHEAD
EPS = 1e-5   # nn.LayerNorm default
VEC_W = NHEAD * D_MODEL          # 128 — width of the bias/LayerNorm slab


# ----------------------------- shared math -----------------------------------
def _layernorm(x, g, b):
    mean = jnp.mean(x, axis=-1, keepdims=True)
    var = jnp.mean((x - mean) ** 2, axis=-1, keepdims=True)
    return (x - mean) * lax.rsqrt(var + EPS) * g + b


# --------------------------------- kernel -------------------------------------
def decoder_layer_kernel(tgt_ref, mem_ref, qpos_ref, pos_ref,
                         w_ref, w2_ref, vec_ref, out_ref):
    D = D_MODEL
    NQ = T * B            # 16 query rows, interleaved as (t, b) -> t*B + b
    NK = S * B            # 32 memory rows, interleaved as (s, b) -> s*B + b

    tgt = tgt_ref[...]    # (NQ, D) f32
    mem = mem_ref[...]    # (NK, D)
    qpos = qpos_ref[...]  # (NQ, D)
    pos = pos_ref[...]    # (NK, D)
    W = w_ref[...]        # (D, 448) packed weight slab
    W2 = w2_ref[...]      # (DIM_FF, D)
    V = vec_ref[...]      # (16, 128) packed biases / LayerNorm params

    # ---- unpack weight slab (no sub-block crosses a 128-lane tile) ----
    sa_wvo = W[:, 0:128]            # fused per-head Wv@Wo, self-attn
    ca_wvo = W[:, 128:256]          # fused per-head Wv@Wo, cross-attn
    sa_wqk = W[:, 256:320]          # fused (pre-scaled Q | K) self-attn proj
    w1 = W[:, 320:384]              # FFN first layer
    ca_wq = W[:, 384:416]           # pre-scaled cross-attn Q proj
    ca_wk = W[:, 416:448]

    # ---- unpack bias / LayerNorm slab (static sublane slices) ----
    sa_bqk = V[0:1, 0:2 * D]
    sa_bvo = V[1:2, :]
    sa_bo = V[2:3, 0:D]
    ca_bq = V[3:4, 0:D]
    ca_bk = V[4:5, 0:D]
    ca_bvo = V[5:6, :]
    ca_bo = V[6:7, 0:D]
    b1 = V[7:8, 0:DIM_FF]
    b2 = V[8:9, 0:D]
    g1, be1 = V[9:10, 0:D], V[10:11, 0:D]
    g2, be2 = V[11:12, 0:D], V[12:13, 0:D]
    g3, be3 = V[13:14, 0:D], V[14:15, 0:D]

    # ---- additive masks keeping attention within each batch element ----
    neg = jnp.float32(-1e30)
    rq = lax.broadcasted_iota(jnp.int32, (NQ, NQ), 0) % B
    ck = lax.broadcasted_iota(jnp.int32, (NQ, NQ), 1) % B
    self_bias = jnp.where(rq == ck, 0.0, neg)               # (NQ, NQ)
    rqx = lax.broadcasted_iota(jnp.int32, (NQ, NK), 0) % B
    ckx = lax.broadcasted_iota(jnp.int32, (NQ, NK), 1) % B
    cross_bias = jnp.where(rqx == ckx, 0.0, neg)             # (NQ, NK)

    def attention(q, k, vo, bias, bo):
        """q: (NQ, D) [pre-scaled], k: (L, D), vo: (L, NHEAD*D), bias: (NQ, L)."""
        acc = None
        for h in range(NHEAD):                               # static unroll, 4
            hs = slice(h * HEAD_DIM, (h + 1) * HEAD_DIM)
            s = lax.dot_general(q[:, hs], k[:, hs], (((1,), (1,)), ((), ())),
                                preferred_element_type=jnp.float32) + bias
            s = s - jnp.max(s, axis=-1, keepdims=True)
            p = jnp.exp(s)
            p = p * pl.reciprocal(jnp.sum(p, axis=-1, keepdims=True),
                                  approx=True)
            contrib = jnp.dot(p, vo[:, h * D:(h + 1) * D],
                              preferred_element_type=jnp.float32)   # (NQ, D)
            acc = contrib if acc is None else acc + contrib
        return acc + bo

    # ---- self-attention block (q = k = tgt + query_pos, value = tgt) ----
    qk_in = tgt + qpos
    qk = jnp.dot(qk_in, sa_wqk, preferred_element_type=jnp.float32) + sa_bqk
    q = qk[:, 0:D]
    k = qk[:, D:2 * D]
    vo = jnp.dot(tgt, sa_wvo, preferred_element_type=jnp.float32) + sa_bvo
    sa = attention(q, k, vo, self_bias, sa_bo)
    x = _layernorm(tgt + sa, g1, be1)

    # ---- cross-attention block (query = x + query_pos, key = mem + pos) ----
    q2 = jnp.dot(x + qpos, ca_wq, preferred_element_type=jnp.float32) + ca_bq
    k2 = jnp.dot(mem + pos, ca_wk, preferred_element_type=jnp.float32) + ca_bk
    vo2 = jnp.dot(mem, ca_wvo, preferred_element_type=jnp.float32) + ca_bvo
    ca = attention(q2, k2, vo2, cross_bias, ca_bo)
    x = _layernorm(x + ca, g2, be2)

    # ---- feed-forward block (ReLU activation) ----
    h = jnp.maximum(
        jnp.dot(x, w1, preferred_element_type=jnp.float32) + b1, 0.0)
    ff = jnp.dot(h, W2, preferred_element_type=jnp.float32) + b2
    x = _layernorm(x + ff, g3, be3)

    out_ref[...] = x.astype(out_ref.dtype)


# ------------------------------- wrapper --------------------------------------
def _full_spec(shape):
    return pl.BlockSpec(shape, lambda i: (0,) * len(shape))


def pack_params(p):
    """Pack the per-matrix params into 3 dense slabs (done once, off the hot path)."""
    hp = lax.Precision.HIGHEST
    scale = 1.0 / math.sqrt(HEAD_DIM)

    def fuse_vo(wv, wo):
        blocks = [jnp.dot(wv[:, h * HEAD_DIM:(h + 1) * HEAD_DIM],
                          wo[h * HEAD_DIM:(h + 1) * HEAD_DIM, :], precision=hp)
                  for h in range(NHEAD)]
        return jnp.concatenate(blocks, axis=1)              # (D, NHEAD*D)

    def fuse_bvo(bv, wo):
        blocks = [jnp.dot(bv[:, h * HEAD_DIM:(h + 1) * HEAD_DIM],
                          wo[h * HEAD_DIM:(h + 1) * HEAD_DIM, :], precision=hp)
                  for h in range(NHEAD)]
        return jnp.concatenate(blocks, axis=1)              # (1, NHEAD*D)

    def pad_row(v):
        return jnp.pad(v, ((0, 0), (0, VEC_W - v.shape[1])))

    w_slab = jnp.concatenate(
        [fuse_vo(p["sa_wv"], p["sa_wo"]),                    # lanes   0:128
         fuse_vo(p["ca_wv"], p["ca_wo"]),                    # lanes 128:256
         jnp.concatenate([p["sa_wq"] * scale, p["sa_wk"]], axis=1),  # 256:320
         p["w1"],                                            # lanes 320:384
         p["ca_wq"] * scale,                                 # lanes 384:416
         p["ca_wk"]], axis=1)                                # lanes 416:448

    rows = [
        pad_row(jnp.concatenate([p["sa_bq"] * scale, p["sa_bk"]], axis=1)),  # 0
        fuse_bvo(p["sa_bv"], p["sa_wo"]),                                    # 1
        pad_row(p["sa_bo"]),                                                 # 2
        pad_row(p["ca_bq"] * scale),                                         # 3
        pad_row(p["ca_bk"]),                                                 # 4
        fuse_bvo(p["ca_bv"], p["ca_wo"]),                                    # 5
        pad_row(p["ca_bo"]),                                                 # 6
        pad_row(p["b1"]),                                                    # 7
        pad_row(p["b2"]),                                                    # 8
        pad_row(p["g1"]), pad_row(p["be1"]),                                 # 9,10
        pad_row(p["g2"]), pad_row(p["be2"]),                                 # 11,12
        pad_row(p["g3"]), pad_row(p["be3"]),                                 # 13,14
        jnp.zeros((1, VEC_W), jnp.float32),                                  # 15
    ]
    vec_slab = jnp.concatenate(rows, axis=0)                 # (16, 128)
    return w_slab, p["w2"], vec_slab


@jax.jit
def transformer_decoder_layer(tgt_tbd, mem_sbd, qpos_tbd, pos_sbd, packed):
    """tgt/query_pos: (T, B, D); memory/pos: (S, B, D)  ->  returns (T, B, D)."""
    # Row-major flatten only (no transposes): row index = seq*B + batch.
    tgt2 = tgt_tbd.reshape(T * B, D_MODEL)
    mem2 = mem_sbd.reshape(S * B, D_MODEL)
    qpos2 = qpos_tbd.reshape(T * B, D_MODEL)
    pos2 = pos_sbd.reshape(S * B, D_MODEL)

    w_slab, w2, vec_slab = packed
    inputs = (tgt2, mem2, qpos2, pos2, w_slab, w2, vec_slab)
    in_specs = [_full_spec(a.shape) for a in inputs]

    out2 = pl.pallas_call(
        decoder_layer_kernel,
        out_shape=jax.ShapeDtypeStruct((T * B, D_MODEL), jnp.float32),
        grid_spec=pltpu.PrefetchScalarGridSpec(
            num_scalar_prefetch=0,
            grid=(1,),                      # single invocation: all data in VMEM
            in_specs=in_specs,
            out_specs=pl.BlockSpec((T * B, D_MODEL), lambda i: (0, 0)),
        ),
        compiler_params=pltpu.CompilerParams(
            dimension_semantics=("arbitrary",)),
    )(*inputs)

    return out2.reshape(T, B, D_MODEL)


# --------------------------- deterministic params -----------------------------
def init_params(key):
    ks = jax.random.split(key, 32)
    i = 0

    def nxt(shape, scale=0.1):
        nonlocal i
        v = scale * jax.random.normal(ks[i], shape, dtype=jnp.float32)
        i += 1
        return v

    p = {}
    # attention projections stored as x @ W (D, D) (transposed vs PyTorch)
    for pre in ("sa", "ca"):
        p[f"{pre}_wq"] = nxt((D_MODEL, D_MODEL))
        p[f"{pre}_bq"] = nxt((1, D_MODEL))
        p[f"{pre}_wk"] = nxt((D_MODEL, D_MODEL))
        p[f"{pre}_bk"] = nxt((1, D_MODEL))
        p[f"{pre}_wv"] = nxt((D_MODEL, D_MODEL))
        p[f"{pre}_bv"] = nxt((1, D_MODEL))
        p[f"{pre}_wo"] = nxt((D_MODEL, D_MODEL))
        p[f"{pre}_bo"] = nxt((1, D_MODEL))
    # FFN
    p["w1"] = nxt((D_MODEL, DIM_FF))
    p["b1"] = nxt((1, DIM_FF))
    p["w2"] = nxt((DIM_FF, D_MODEL))
    p["b2"] = nxt((1, D_MODEL))
    # LayerNorms (PyTorch default init: weight=1, bias=0)
    for n in ("1", "2", "3"):
        p[f"g{n}"] = jnp.ones((1, D_MODEL), jnp.float32)
        p[f"be{n}"] = jnp.zeros((1, D_MODEL), jnp.float32)
    return p


# ----------------------------- pure-JAX reference -----------------------------
def _ref_mha(q_in, k_in, v_in, wq, bq, wk, bk, wv, bv, wo, bo):
    hp = lax.Precision.HIGHEST
    q = jnp.dot(q_in, wq, precision=hp) + bq
    k = jnp.dot(k_in, wk, precision=hp) + bk
    v = jnp.dot(v_in, wv, precision=hp) + bv
    scale = 1.0 / math.sqrt(HEAD_DIM)
    heads = []
    for h in range(NHEAD):
        sl = slice(h * HEAD_DIM, (h + 1) * HEAD_DIM)
        s = jnp.dot(q[:, sl] * scale, k[:, sl].T, precision=hp)
        p = jax.nn.softmax(s, axis=-1)
        heads.append(jnp.dot(p, v[:, sl], precision=hp))
    return jnp.dot(jnp.concatenate(heads, -1), wo, precision=hp) + bo


def ref_forward(tgt_tbd, mem_sbd, qpos_tbd, pos_sbd, p):
    hp = lax.Precision.HIGHEST

    def one_batch(tgt, mem, qpos, pos):
        qk = tgt + qpos
        sa = _ref_mha(qk, qk, tgt, p["sa_wq"], p["sa_bq"], p["sa_wk"],
                      p["sa_bk"], p["sa_wv"], p["sa_bv"], p["sa_wo"], p["sa_bo"])
        x = _layernorm(tgt + sa, p["g1"], p["be1"])
        ca = _ref_mha(x + qpos, mem + pos, mem, p["ca_wq"], p["ca_bq"],
                      p["ca_wk"], p["ca_bk"], p["ca_wv"], p["ca_bv"],
                      p["ca_wo"], p["ca_bo"])
        x = _layernorm(x + ca, p["g2"], p["be2"])
        h = jnp.maximum(jnp.dot(x, p["w1"], precision=hp) + p["b1"], 0.0)
        ff = jnp.dot(h, p["w2"], precision=hp) + p["b2"]
        return _layernorm(x + ff, p["g3"], p["be3"])

    out_btd = jax.vmap(one_batch)(
        jnp.transpose(tgt_tbd, (1, 0, 2)), jnp.transpose(mem_sbd, (1, 0, 2)),
        jnp.transpose(qpos_tbd, (1, 0, 2)), jnp.transpose(pos_sbd, (1, 0, 2)))
    return jnp.transpose(out_btd, (1, 0, 2))


# ---------------------------------- main ---------------------------------------
if __name__ == "__main__":
    key = jax.random.PRNGKey(0)
    k_in, k_mem, k_qp, k_pos, k_par = jax.random.split(key, 5)

    # PyTorch layout: tgt (T, B, D), memory (S, B, D)
    tgt = jax.random.normal(k_in, (T, B, D_MODEL), dtype=jnp.float32)
    memory = jax.random.normal(k_mem, (S, B, D_MODEL), dtype=jnp.float32)
    query_pos = jax.random.normal(k_qp, (T, B, D_MODEL), dtype=jnp.float32)
    pos = jax.random.normal(k_pos, (S, B, D_MODEL), dtype=jnp.float32)

    params = init_params(k_par)
    packed = jax.block_until_ready(pack_params(params))   # done once, off hot path

    out = transformer_decoder_layer(tgt, memory, query_pos, pos, packed)
    out = jax.block_until_ready(out)

    ref = jax.block_until_ready(ref_forward(tgt, memory, query_pos, pos, params))
    assert out.shape == (T, B, D_MODEL)
    assert jnp.allclose(out, ref, atol=1e-2, rtol=1e-2), (
        float(jnp.max(jnp.abs(out - ref))))

    print("KERNEL_OK")
</pallas_src>

<mosaic_0001>
module attributes {stable_mosaic.version = 11 : i64} {
  func.func @decoder_layer_kernel(%arg0: i32, %arg1: memref<16x32xf32, #tpu.memory_space<vmem>>, %arg2: memref<32x32xf32, #tpu.memory_space<vmem>>, %arg3: memref<16x32xf32, #tpu.memory_space<vmem>>, %arg4: memref<32x32xf32, #tpu.memory_space<vmem>>, %arg5: memref<32x448xf32, #tpu.memory_space<vmem>>, %arg6: memref<64x32xf32, #tpu.memory_space<vmem>>, %arg7: memref<16x128xf32, #tpu.memory_space<vmem>>, %arg8: memref<16x32xf32, #tpu.memory_space<vmem>>) attributes {dimension_semantics = [#tpu.dimension_semantics<arbitrary>], iteration_bounds = array<i64: 1>, scalar_prefetch = 0 : i64, scratch_operands = 0 : i64, tpu.core_type = #tpu.core_type<tc>, window_params = [{pipeline_mode = #tpu.pipeline_mode<synchronous>, transform_indices = @transform_0, window_bounds = array<i64: 16, 32>}, {pipeline_mode = #tpu.pipeline_mode<synchronous>, transform_indices = @transform_1, window_bounds = array<i64: 32, 32>}, {pipeline_mode = #tpu.pipeline_mode<synchronous>, transform_indices = @transform_2, window_bounds = array<i64: 16, 32>}, {pipeline_mode = #tpu.pipeline_mode<synchronous>, transform_indices = @transform_3, window_bounds = array<i64: 32, 32>}, {pipeline_mode = #tpu.pipeline_mode<synchronous>, transform_indices = @transform_4, window_bounds = array<i64: 32, 448>}, {pipeline_mode = #tpu.pipeline_mode<synchronous>, transform_indices = @transform_5, window_bounds = array<i64: 64, 32>}, {pipeline_mode = #tpu.pipeline_mode<synchronous>, transform_indices = @transform_6, window_bounds = array<i64: 16, 128>}, {pipeline_mode = #tpu.pipeline_mode<synchronous>, transform_indices = @transform_7, window_bounds = array<i64: 16, 32>}]} {
    %c0 = arith.constant 0 : index
    %c0_0 = arith.constant 0 : index
    %0 = vector.load %arg1[%c0, %c0_0] : memref<16x32xf32, #tpu.memory_space<vmem>>, vector<16x32xf32>
    %c0_1 = arith.constant 0 : index
    %c0_2 = arith.constant 0 : index
    %1 = vector.load %arg2[%c0_1, %c0_2] : memref<32x32xf32, #tpu.memory_space<vmem>>, vector<32x32xf32>
    %c0_3 = arith.constant 0 : index
    %c0_4 = arith.constant 0 : index
    %2 = vector.load %arg3[%c0_3, %c0_4] : memref<16x32xf32, #tpu.memory_space<vmem>>, vector<16x32xf32>
    %c0_5 = arith.constant 0 : index
    %c0_6 = arith.constant 0 : index
    %3 = vector.load %arg4[%c0_5, %c0_6] : memref<32x32xf32, #tpu.memory_space<vmem>>, vector<32x32xf32>
    %c0_7 = arith.constant 0 : index
    %c0_8 = arith.constant 0 : index
    %4 = vector.load %arg5[%c0_7, %c0_8] : memref<32x448xf32, #tpu.memory_space<vmem>>, vector<32x448xf32>
    %c0_9 = arith.constant 0 : index
    %c0_10 = arith.constant 0 : index
    %5 = vector.load %arg6[%c0_9, %c0_10] : memref<64x32xf32, #tpu.memory_space<vmem>>, vector<64x32xf32>
    %c0_11 = arith.constant 0 : index
    %c0_12 = arith.constant 0 : index
    %6 = vector.load %arg7[%c0_11, %c0_12] : memref<16x128xf32, #tpu.memory_space<vmem>>, vector<16x128xf32>
    %7 = vector.extract_strided_slice %4 {offsets = [0, 0], sizes = [32, 128], strides = [1, 1]} : vector<32x448xf32> to vector<32x128xf32>
    %8 = vector.extract_strided_slice %4 {offsets = [0, 128], sizes = [32, 128], strides = [1, 1]} : vector<32x448xf32> to vector<32x128xf32>
    %9 = vector.extract_strided_slice %4 {offsets = [0, 256], sizes = [32, 64], strides = [1, 1]} : vector<32x448xf32> to vector<32x64xf32>
    %10 = vector.extract_strided_slice %4 {offsets = [0, 320], sizes = [32, 64], strides = [1, 1]} : vector<32x448xf32> to vector<32x64xf32>
    %11 = vector.extract_strided_slice %4 {offsets = [0, 384], sizes = [32, 32], strides = [1, 1]} : vector<32x448xf32> to vector<32x32xf32>
    %12 = vector.extract_strided_slice %4 {offsets = [0, 416], sizes = [32, 32], strides = [1, 1]} : vector<32x448xf32> to vector<32x32xf32>
    %13 = vector.extract_strided_slice %6 {offsets = [0, 0], sizes = [1, 64], strides = [1, 1]} : vector<16x128xf32> to vector<1x64xf32>
    %14 = vector.extract_strided_slice %6 {offsets = [1, 0], sizes = [1, 128], strides = [1, 1]} : vector<16x128xf32> to vector<1x128xf32>
    %15 = vector.extract_strided_slice %6 {offsets = [2, 0], sizes = [1, 32], strides = [1, 1]} : vector<16x128xf32> to vector<1x32xf32>
    %16 = vector.extract_strided_slice %6 {offsets = [3, 0], sizes = [1, 32], strides = [1, 1]} : vector<16x128xf32> to vector<1x32xf32>
    %17 = vector.extract_strided_slice %6 {offsets = [4, 0], sizes = [1, 32], strides = [1, 1]} : vector<16x128xf32> to vector<1x32xf32>
    %18 = vector.extract_strided_slice %6 {offsets = [5, 0], sizes = [1, 128], strides = [1, 1]} : vector<16x128xf32> to vector<1x128xf32>
    %19 = vector.extract_strided_slice %6 {offsets = [6, 0], sizes = [1, 32], strides = [1, 1]} : vector<16x128xf32> to vector<1x32xf32>
    %20 = vector.extract_strided_slice %6 {offsets = [7, 0], sizes = [1, 64], strides = [1, 1]} : vector<16x128xf32> to vector<1x64xf32>
    %21 = vector.extract_strided_slice %6 {offsets = [8, 0], sizes = [1, 32], strides = [1, 1]} : vector<16x128xf32> to vector<1x32xf32>
    %22 = vector.extract_strided_slice %6 {offsets = [9, 0], sizes = [1, 32], strides = [1, 1]} : vector<16x128xf32> to vector<1x32xf32>
    %23 = vector.extract_strided_slice %6 {offsets = [10, 0], sizes = [1, 32], strides = [1, 1]} : vector<16x128xf32> to vector<1x32xf32>
    %24 = vector.extract_strided_slice %6 {offsets = [11, 0], sizes = [1, 32], strides = [1, 1]} : vector<16x128xf32> to vector<1x32xf32>
    %25 = vector.extract_strided_slice %6 {offsets = [12, 0], sizes = [1, 32], strides = [1, 1]} : vector<16x128xf32> to vector<1x32xf32>
    %26 = vector.extract_strided_slice %6 {offsets = [13, 0], sizes = [1, 32], strides = [1, 1]} : vector<16x128xf32> to vector<1x32xf32>
    %27 = vector.extract_strided_slice %6 {offsets = [14, 0], sizes = [1, 32], strides = [1, 1]} : vector<16x128xf32> to vector<1x32xf32>
    %28 = tpu.iota {dimensions = array<i32: 0>} : vector<16x16xi32>
    %c2_i32 = arith.constant 2 : i32
    %c0_i32 = arith.constant 0 : i32
    %29 = arith.cmpi eq, %c2_i32, %c0_i32 : i32
    %c1_i32 = arith.constant 1 : i32
    %30 = arith.select %29, %c1_i32, %c2_i32 : i32
    %31 = vector.broadcast %30 : i32 to vector<16x16xi32>
    %32 = arith.remsi %28, %31 : vector<16x16xi32>
    %c0_i32_13 = arith.constant 0 : i32
    %33 = vector.broadcast %c0_i32_13 : i32 to vector<16x16xi32>
    %34 = arith.cmpi ne, %32, %33 : vector<16x16xi32>
    %c0_i32_14 = arith.constant 0 : i32
    %35 = vector.broadcast %c0_i32_14 : i32 to vector<16x16xi32>
    %36 = arith.cmpi slt, %32, %35 : vector<16x16xi32>
    %c0_i32_15 = arith.constant 0 : i32
    %37 = arith.cmpi slt, %30, %c0_i32_15 : i32
    %38 = vector.broadcast %37 : i1 to vector<16x16xi1>
    %39 = vector.broadcast %38 : vector<16x16xi1> to vector<16x16xi1>
    %40 = arith.xori %36, %39 : vector<16x16xi1>
    %41 = arith.andi %40, %34 : vector<16x16xi1>
    %42 = vector.broadcast %30 : i32 to vector<16x16xi32>
    %43 = arith.addi %32, %42 : vector<16x16xi32>
    %44 = arith.select %41, %43, %32 : vector<16x16xi1>, vector<16x16xi32>
    %45 = tpu.iota {dimensions = array<i32: 1>} : vector<16x16xi32>
    %c2_i32_16 = arith.constant 2 : i32
    %c0_i32_17 = arith.constant 0 : i32
    %46 = arith.cmpi eq, %c2_i32_16, %c0_i32_17 : i32
    %c1_i32_18 = arith.constant 1 : i32
    %47 = arith.select %46, %c1_i32_18, %c2_i32_16 : i32
    %48 = vector.broadcast %47 : i32 to vector<16x16xi32>
    %49 = arith.remsi %45, %48 : vector<16x16xi32>
    %c0_i32_19 = arith.constant 0 : i32
    %50 = vector.broadcast %c0_i32_19 : i32 to vector<16x16xi32>
    %51 = arith.cmpi ne, %49, %50 : vector<16x16xi32>
    %c0_i32_20 = arith.constant 0 : i32
    %52 = vector.broadcast %c0_i32_20 : i32 to vector<16x16xi32>
    %53 = arith.cmpi slt, %49, %52 : vector<16x16xi32>
    %c0_i32_21 = arith.constant 0 : i32
    %54 = arith.cmpi slt, %47, %c0_i32_21 : i32
    %55 = vector.broadcast %54 : i1 to vector<16x16xi1>
    %56 = vector.broadcast %55 : vector<16x16xi1> to vector<16x16xi1>
    %57 = arith.xori %53, %56 : vector<16x16xi1>
    %58 = arith.andi %57, %51 : vector<16x16xi1>
    %59 = vector.broadcast %47 : i32 to vector<16x16xi32>
    %60 = arith.addi %49, %59 : vector<16x16xi32>
    %61 = arith.select %58, %60, %49 : vector<16x16xi1>, vector<16x16xi32>
    %62 = arith.cmpi eq, %44, %61 : vector<16x16xi32>
    %cst = arith.constant 0.000000e+00 : f32
    %cst_22 = arith.constant -1.000000e+30 : f32
    %63 = vector.broadcast %cst : f32 to vector<16x16xf32>
    %64 = vector.broadcast %cst_22 : f32 to vector<16x16xf32>
    %65 = arith.select %62, %63, %64 : vector<16x16xi1>, vector<16x16xf32>
    %66 = tpu.iota {dimensions = array<i32: 0>} : vector<16x32xi32>
    %c2_i32_23 = arith.constant 2 : i32
    %c0_i32_24 = arith.constant 0 : i32
    %67 = arith.cmpi eq, %c2_i32_23, %c0_i32_24 : i32
    %c1_i32_25 = arith.constant 1 : i32
    %68 = arith.select %67, %c1_i32_25, %c2_i32_23 : i32
    %69 = vector.broadcast %68 : i32 to vector<16x32xi32>
    %70 = arith.remsi %66, %69 : vector<16x32xi32>
    %c0_i32_26 = arith.constant 0 : i32
    %71 = vector.broadcast %c0_i32_26 : i32 to vector<16x32xi32>
    %72 = arith.cmpi ne, %70, %71 : vector<16x32xi32>
    %c0_i32_27 = arith.constant 0 : i32
    %73 = vector.broadcast %c0_i32_27 : i32 to vector<16x32xi32>
    %74 = arith.cmpi slt, %70, %73 : vector<16x32xi32>
    %c0_i32_28 = arith.constant 0 : i32
    %75 = arith.cmpi slt, %68, %c0_i32_28 : i32
    %76 = vector.broadcast %75 : i1 to vector<16x32xi1>
    %77 = vector.broadcast %76 : vector<16x32xi1> to vector<16x32xi1>
    %78 = arith.xori %74, %77 : vector<16x32xi1>
    %79 = arith.andi %78, %72 : vector<16x32xi1>
    %80 = vector.broadcast %68 : i32 to vector<16x32xi32>
    %81 = arith.addi %70, %80 : vector<16x32xi32>
    %82 = arith.select %79, %81, %70 : vector<16x32xi1>, vector<16x32xi32>
    %83 = tpu.iota {dimensions = array<i32: 1>} : vector<16x32xi32>
    %c2_i32_29 = arith.constant 2 : i32
    %c0_i32_30 = arith.constant 0 : i32
    %84 = arith.cmpi eq, %c2_i32_29, %c0_i32_30 : i32
    %c1_i32_31 = arith.constant 1 : i32
    %85 = arith.select %84, %c1_i32_31, %c2_i32_29 : i32
    %86 = vector.broadcast %85 : i32 to vector<16x32xi32>
    %87 = arith.remsi %83, %86 : vector<16x32xi32>
    %c0_i32_32 = arith.constant 0 : i32
    %88 = vector.broadcast %c0_i32_32 : i32 to vector<16x32xi32>
    %89 = arith.cmpi ne, %87, %88 : vector<16x32xi32>
    %c0_i32_33 = arith.constant 0 : i32
    %90 = vector.broadcast %c0_i32_33 : i32 to vector<16x32xi32>
    %91 = arith.cmpi slt, %87, %90 : vector<16x32xi32>
    %c0_i32_34 = arith.constant 0 : i32
    %92 = arith.cmpi slt, %85, %c0_i32_34 : i32
    %93 = vector.broadcast %92 : i1 to vector<16x32xi1>
    %94 = vector.broadcast %93 : vector<16x32xi1> to vector<16x32xi1>
    %95 = arith.xori %91, %94 : vector<16x32xi1>
    %96 = arith.andi %95, %89 : vector<16x32xi1>
    %97 = vector.broadcast %85 : i32 to vector<16x32xi32>
    %98 = arith.addi %87, %97 : vector<16x32xi32>
    %99 = arith.select %96, %98, %87 : vector<16x32xi1>, vector<16x32xi32>
    %100 = arith.cmpi eq, %82, %99 : vector<16x32xi32>
    %cst_35 = arith.constant 0.000000e+00 : f32
    %cst_36 = arith.constant -1.000000e+30 : f32
    %101 = vector.broadcast %cst_35 : f32 to vector<16x32xf32>
    %102 = vector.broadcast %cst_36 : f32 to vector<16x32xf32>
    %103 = arith.select %100, %101, %102 : vector<16x32xi1>, vector<16x32xf32>
    %104 = arith.addf %0, %2 : vector<16x32xf32>
    %cst_37 = arith.constant dense<0.000000e+00> : vector<16x64xf32>
    %105 = tpu.matmul %104, %9, %cst_37 {dimension_numbers = #tpu.dot_dimension_numbers<[1], [0], [0], [1], [0, 0, 1, 1], [], []>} : vector<16x32xf32>, vector<32x64xf32>, vector<16x64xf32> -> vector<16x64xf32>
    %106 = vector.broadcast %13 : vector<1x64xf32> to vector<16x64xf32>
    %107 = arith.addf %105, %106 : vector<16x64xf32>
    %108 = vector.extract_strided_slice %107 {offsets = [0, 0], sizes = [16, 32], strides = [1, 1]} : vector<16x64xf32> to vector<16x32xf32>
    %109 = vector.extract_strided_slice %107 {offsets = [0, 32], sizes = [16, 32], strides = [1, 1]} : vector<16x64xf32> to vector<16x32xf32>
    %cst_38 = arith.constant dense<0.000000e+00> : vector<16x128xf32>
    %110 = tpu.matmul %0, %7, %cst_38 {dimension_numbers = #tpu.dot_dimension_numbers<[1], [0], [0], [1], [0, 0, 1, 1], [], []>} : vector<16x32xf32>, vector<32x128xf32>, vector<16x128xf32> -> vector<16x128xf32>
    %111 = vector.broadcast %14 : vector<1x128xf32> to vector<16x128xf32>
    %112 = arith.addf %110, %111 : vector<16x128xf32>
    %113 = vector.extract_strided_slice %108 {offsets = [0, 0], sizes = [16, 8], strides = [1, 1]} : vector<16x32xf32> to vector<16x8xf32>
    %114 = vector.extract_strided_slice %109 {offsets = [0, 0], sizes = [16, 8], strides = [1, 1]} : vector<16x32xf32> to vector<16x8xf32>
    %cst_39 = arith.constant dense<0.000000e+00> : vector<16x16xf32>
    %115 = tpu.matmul %113, %114, %cst_39 {dimension_numbers = #tpu.dot_dimension_numbers<[1], [1], [0], [0], [0, 0, 1, 0], [], []>} : vector<16x8xf32>, vector<16x8xf32>, vector<16x16xf32> -> vector<16x16xf32>
    %116 = arith.addf %115, %65 : vector<16x16xf32>
    %cst_40 = arith.constant dense<0xFF800000> : vector<16xf32>
    %117 = vector.multi_reduction <maximumf>, %116, %cst_40 [1] : vector<16x16xf32> to vector<16xf32>
    %118 = vector.shape_cast %117 : vector<16xf32> to vector<16x1xf32>
    %119 = vector.broadcast %118 : vector<16x1xf32> to vector<16x16xf32>
    %120 = arith.subf %116, %119 : vector<16x16xf32>
    %121 = math.exp %120 : vector<16x16xf32>
    %cst_41 = arith.constant dense<0.000000e+00> : vector<16xf32>
    %122 = vector.multi_reduction <add>, %121, %cst_41 [1] : vector<16x16xf32> to vector<16xf32>
    %123 = vector.shape_cast %122 : vector<16xf32> to vector<16x1xf32>
    %124 = tpu.reciprocal %123 {approx = true} : vector<16x1xf32> -> vector<16x1xf32>
    %125 = vector.broadcast %124 : vector<16x1xf32> to vector<16x16xf32>
    %126 = arith.mulf %121, %125 : vector<16x16xf32>
    %127 = vector.extract_strided_slice %112 {offsets = [0, 0], sizes = [16, 32], strides = [1, 1]} : vector<16x128xf32> to vector<16x32xf32>
    %cst_42 = arith.constant dense<0.000000e+00> : vector<16x32xf32>
    %128 = tpu.matmul %126, %127, %cst_42 {dimension_numbers = #tpu.dot_dimension_numbers<[1], [0], [0], [1], [0, 0, 1, 1], [], []>} : vector<16x16xf32>, vector<16x32xf32>, vector<16x32xf32> -> vector<16x32xf32>
    %129 = vector.extract_strided_slice %108 {offsets = [0, 8], sizes = [16, 8], strides = [1, 1]} : vector<16x32xf32> to vector<16x8xf32>
    %130 = vector.extract_strided_slice %109 {offsets = [0, 8], sizes = [16, 8], strides = [1, 1]} : vector<16x32xf32> to vector<16x8xf32>
    %cst_43 = arith.constant dense<0.000000e+00> : vector<16x16xf32>
    %131 = tpu.matmul %129, %130, %cst_43 {dimension_numbers = #tpu.dot_dimension_numbers<[1], [1], [0], [0], [0, 0, 1, 0], [], []>} : vector<16x8xf32>, vector<16x8xf32>, vector<16x16xf32> -> vector<16x16xf32>
    %132 = arith.addf %131, %65 : vector<16x16xf32>
    %cst_44 = arith.constant dense<0xFF800000> : vector<16xf32>
    %133 = vector.multi_reduction <maximumf>, %132, %cst_44 [1] : vector<16x16xf32> to vector<16xf32>
    %134 = vector.shape_cast %133 : vector<16xf32> to vector<16x1xf32>
    %135 = vector.broadcast %134 : vector<16x1xf32> to vector<16x16xf32>
    %136 = arith.subf %132, %135 : vector<16x16xf32>
    %137 = math.exp %136 : vector<16x16xf32>
    %cst_45 = arith.constant dense<0.000000e+00> : vector<16xf32>
    %138 = vector.multi_reduction <add>, %137, %cst_45 [1] : vector<16x16xf32> to vector<16xf32>
    %139 = vector.shape_cast %138 : vector<16xf32> to vector<16x1xf32>
    %140 = tpu.reciprocal %139 {approx = true} : vector<16x1xf32> -> vector<16x1xf32>
    %141 = vector.broadcast %140 : vector<16x1xf32> to vector<16x16xf32>
    %142 = arith.mulf %137, %141 : vector<16x16xf32>
    %143 = vector.extract_strided_slice %112 {offsets = [0, 32], sizes = [16, 32], strides = [1, 1]} : vector<16x128xf32> to vector<16x32xf32>
    %cst_46 = arith.constant dense<0.000000e+00> : vector<16x32xf32>
    %144 = tpu.matmul %142, %143, %cst_46 {dimension_numbers = #tpu.dot_dimension_numbers<[1], [0], [0], [1], [0, 0, 1, 1], [], []>} : vector<16x16xf32>, vector<16x32xf32>, vector<16x32xf32> -> vector<16x32xf32>
    %145 = arith.addf %128, %144 : vector<16x32xf32>
    %146 = vector.extract_strided_slice %108 {offsets = [0, 16], sizes = [16, 8], strides = [1, 1]} : vector<16x32xf32> to vector<16x8xf32>
    %147 = vector.extract_strided_slice %109 {offsets = [0, 16], sizes = [16, 8], strides = [1, 1]} : vector<16x32xf32> to vector<16x8xf32>
    %cst_47 = arith.constant dense<0.000000e+00> : vector<16x16xf32>
    %148 = tpu.matmul %146, %147, %cst_47 {dimension_numbers = #tpu.dot_dimension_numbers<[1], [1], [0], [0], [0, 0, 1, 0], [], []>} : vector<16x8xf32>, vector<16x8xf32>, vector<16x16xf32> -> vector<16x16xf32>
    %149 = arith.addf %148, %65 : vector<16x16xf32>
    %cst_48 = arith.constant dense<0xFF800000> : vector<16xf32>
    %150 = vector.multi_reduction <maximumf>, %149, %cst_48 [1] : vector<16x16xf32> to vector<16xf32>
    %151 = vector.shape_cast %150 : vector<16xf32> to vector<16x1xf32>
    %152 = vector.broadcast %151 : vector<16x1xf32> to vector<16x16xf32>
    %153 = arith.subf %149, %152 : vector<16x16xf32>
    %154 = math.exp %153 : vector<16x16xf32>
    %cst_49 = arith.constant dense<0.000000e+00> : vector<16xf32>
    %155 = vector.multi_reduction <add>, %154, %cst_49 [1] : vector<16x16xf32> to vector<16xf32>
    %156 = vector.shape_cast %155 : vector<16xf32> to vector<16x1xf32>
    %157 = tpu.reciprocal %156 {approx = true} : vector<16x1xf32> -> vector<16x1xf32>
    %158 = vector.broadcast %157 : vector<16x1xf32> to vector<16x16xf32>
    %159 = arith.mulf %154, %158 : vector<16x16xf32>
    %160 = vector.extract_strided_slice %112 {offsets = [0, 64], sizes = [16, 32], strides = [1, 1]} : vector<16x128xf32> to vector<16x32xf32>
    %cst_50 = arith.constant dense<0.000000e+00> : vector<16x32xf32>
    %161 = tpu.matmul %159, %160, %cst_50 {dimension_numbers = #tpu.dot_dimension_numbers<[1], [0], [0], [1], [0, 0, 1, 1], [], []>} : vector<16x16xf32>, vector<16x32xf32>, vector<16x32xf32> -> vector<16x32xf32>
    %162 = arith.addf %145, %161 : vector<16x32xf32>
    %163 = vector.extract_strided_slice %108 {offsets = [0, 24], sizes = [16, 8], strides = [1, 1]} : vector<16x32xf32> to vector<16x8xf32>
    %164 = vector.extract_strided_slice %109 {offsets = [0, 24], sizes = [16, 8], strides = [1, 1]} : vector<16x32xf32> to vector<16x8xf32>
    %cst_51 = arith.constant dense<0.000000e+00> : vector<16x16xf32>
    %165 = tpu.matmul %163, %164, %cst_51 {dimension_numbers = #tpu.dot_dimension_numbers<[1], [1], [0], [0], [0, 0, 1, 0], [], []>} : vector<16x8xf32>, vector<16x8xf32>, vector<16x16xf32> -> vector<16x16xf32>
    %166 = arith.addf %165, %65 : vector<16x16xf32>
    %cst_52 = arith.constant dense<0xFF800000> : vector<16xf32>
    %167 = vector.multi_reduction <maximumf>, %166, %cst_52 [1] : vector<16x16xf32> to vector<16xf32>
    %168 = vector.shape_cast %167 : vector<16xf32> to vector<16x1xf32>
    %169 = vector.broadcast %168 : vector<16x1xf32> to vector<16x16xf32>
    %170 = arith.subf %166, %169 : vector<16x16xf32>
    %171 = math.exp %170 : vector<16x16xf32>
    %cst_53 = arith.constant dense<0.000000e+00> : vector<16xf32>
    %172 = vector.multi_reduction <add>, %171, %cst_53 [1] : vector<16x16xf32> to vector<16xf32>
    %173 = vector.shape_cast %172 : vector<16xf32> to vector<16x1xf32>
    %174 = tpu.reciprocal %173 {approx = true} : vector<16x1xf32> -> vector<16x1xf32>
    %175 = vector.broadcast %174 : vector<16x1xf32> to vector<16x16xf32>
    %176 = arith.mulf %171, %175 : vector<16x16xf32>
    %177 = vector.extract_strided_slice %112 {offsets = [0, 96], sizes = [16, 32], strides = [1, 1]} : vector<16x128xf32> to vector<16x32xf32>
    %cst_54 = arith.constant dense<0.000000e+00> : vector<16x32xf32>
    %178 = tpu.matmul %176, %177, %cst_54 {dimension_numbers = #tpu.dot_dimension_numbers<[1], [0], [0], [1], [0, 0, 1, 1], [], []>} : vector<16x16xf32>, vector<16x32xf32>, vector<16x32xf32> -> vector<16x32xf32>
    %179 = arith.addf %162, %178 : vector<16x32xf32>
    %180 = vector.broadcast %15 : vector<1x32xf32> to vector<16x32xf32>
    %181 = arith.addf %179, %180 : vector<16x32xf32>
    %182 = arith.addf %0, %181 : vector<16x32xf32>
    %cst_55 = arith.constant dense<0.000000e+00> : vector<16xf32>
    %183 = vector.multi_reduction <add>, %182, %cst_55 [1] : vector<16x32xf32> to vector<16xf32>
    %184 = vector.shape_cast %183 : vector<16xf32> to vector<16x1xf32>
    %cst_56 = arith.constant 3.200000e+01 : f32
    %185 = vector.broadcast %cst_56 : f32 to vector<16x1xf32>
    %186 = arith.divf %184, %185 : vector<16x1xf32>
    %187 = vector.broadcast %186 : vector<16x1xf32> to vector<16x32xf32>
    %188 = arith.subf %182, %187 : vector<16x32xf32>
    %189 = arith.mulf %188, %188 : vector<16x32xf32>
    %cst_57 = arith.constant dense<0.000000e+00> : vector<16xf32>
    %190 = vector.multi_reduction <add>, %189, %cst_57 [1] : vector<16x32xf32> to vector<16xf32>
    %191 = vector.shape_cast %190 : vector<16xf32> to vector<16x1xf32>
    %cst_58 = arith.constant 3.200000e+01 : f32
    %192 = vector.broadcast %cst_58 : f32 to vector<16x1xf32>
    %193 = arith.divf %191, %192 : vector<16x1xf32>
    %194 = vector.broadcast %186 : vector<16x1xf32> to vector<16x32xf32>
    %195 = arith.subf %182, %194 : vector<16x32xf32>
    %cst_59 = arith.constant 9.99999974E-6 : f32
    %196 = vector.broadcast %cst_59 : f32 to vector<16x1xf32>
    %197 = arith.addf %193, %196 : vector<16x1xf32>
    %198 = math.rsqrt %197 : vector<16x1xf32>
    %199 = vector.broadcast %198 : vector<16x1xf32> to vector<16x32xf32>
    %200 = arith.mulf %195, %199 : vector<16x32xf32>
    %201 = vector.broadcast %22 : vector<1x32xf32> to vector<16x32xf32>
    %202 = arith.mulf %200, %201 : vector<16x32xf32>
    %203 = vector.broadcast %23 : vector<1x32xf32> to vector<16x32xf32>
    %204 = arith.addf %202, %203 : vector<16x32xf32>
    %205 = arith.addf %204, %2 : vector<16x32xf32>
    %cst_60 = arith.constant dense<0.000000e+00> : vector<16x32xf32>
    %206 = tpu.matmul %205, %11, %cst_60 {dimension_numbers = #tpu.dot_dimension_numbers<[1], [0], [0], [1], [0, 0, 1, 1], [], []>} : vector<16x32xf32>, vector<32x32xf32>, vector<16x32xf32> -> vector<16x32xf32>
    %207 = vector.broadcast %16 : vector<1x32xf32> to vector<16x32xf32>
    %208 = arith.addf %206, %207 : vector<16x32xf32>
    %209 = arith.addf %1, %3 : vector<32x32xf32>
    %cst_61 = arith.constant dense<0.000000e+00> : vector<32x32xf32>
    %210 = tpu.matmul %209, %12, %cst_61 {dimension_numbers = #tpu.dot_dimension_numbers<[1], [0], [0], [1], [0, 0, 1, 1], [], []>} : vector<32x32xf32>, vector<32x32xf32>, vector<32x32xf32> -> vector<32x32xf32>
    %211 = vector.broadcast %17 : vector<1x32xf32> to vector<32x32xf32>
    %212 = arith.addf %210, %211 : vector<32x32xf32>
    %cst_62 = arith.constant dense<0.000000e+00> : vector<32x128xf32>
    %213 = tpu.matmul %1, %8, %cst_62 {dimension_numbers = #tpu.dot_dimension_numbers<[1], [0], [0], [1], [0, 0, 1, 1], [], []>} : vector<32x32xf32>, vector<32x128xf32>, vector<32x128xf32> -> vector<32x128xf32>
    %214 = vector.broadcast %18 : vector<1x128xf32> to vector<32x128xf32>
    %215 = arith.addf %213, %214 : vector<32x128xf32>
    %216 = vector.extract_strided_slice %208 {offsets = [0, 0], sizes = [16, 8], strides = [1, 1]} : vector<16x32xf32> to vector<16x8xf32>
    %217 = vector.extract_strided_slice %212 {offsets = [0, 0], sizes = [32, 8], strides = [1, 1]} : vector<32x32xf32> to vector<32x8xf32>
    %cst_63 = arith.constant dense<0.000000e+00> : vector<16x32xf32>
    %218 = tpu.matmul %216, %217, %cst_63 {dimension_numbers = #tpu.dot_dimension_numbers<[1], [1], [0], [0], [0, 0, 1, 0], [], []>} : vector<16x8xf32>, vector<32x8xf32>, vector<16x32xf32> -> vector<16x32xf32>
    %219 = arith.addf %218, %103 : vector<16x32xf32>
    %cst_64 = arith.constant dense<0xFF800000> : vector<16xf32>
    %220 = vector.multi_reduction <maximumf>, %219, %cst_64 [1] : vector<16x32xf32> to vector<16xf32>
    %221 = vector.shape_cast %220 : vector<16xf32> to vector<16x1xf32>
    %222 = vector.broadcast %221 : vector<16x1xf32> to vector<16x32xf32>
    %223 = arith.subf %219, %222 : vector<16x32xf32>
    %224 = math.exp %223 : vector<16x32xf32>
    %cst_65 = arith.constant dense<0.000000e+00> : vector<16xf32>
    %225 = vector.multi_reduction <add>, %224, %cst_65 [1] : vector<16x32xf32> to vector<16xf32>
    %226 = vector.shape_cast %225 : vector<16xf32> to vector<16x1xf32>
    %227 = tpu.reciprocal %226 {approx = true} : vector<16x1xf32> -> vector<16x1xf32>
    %228 = vector.broadcast %227 : vector<16x1xf32> to vector<16x32xf32>
    %229 = arith.mulf %224, %228 : vector<16x32xf32>
    %230 = vector.extract_strided_slice %215 {offsets = [0, 0], sizes = [32, 32], strides = [1, 1]} : vector<32x128xf32> to vector<32x32xf32>
    %cst_66 = arith.constant dense<0.000000e+00> : vector<16x32xf32>
    %231 = tpu.matmul %229, %230, %cst_66 {dimension_numbers = #tpu.dot_dimension_numbers<[1], [0], [0], [1], [0, 0, 1, 1], [], []>} : vector<16x32xf32>, vector<32x32xf32>, vector<16x32xf32> -> vector<16x32xf32>
    %232 = vector.extract_strided_slice %208 {offsets = [0, 8], sizes = [16, 8], strides = [1, 1]} : vector<16x32xf32> to vector<16x8xf32>
    %233 = vector.extract_strided_slice %212 {offsets = [0, 8], sizes = [32, 8], strides = [1, 1]} : vector<32x32xf32> to vector<32x8xf32>
    %cst_67 = arith.constant dense<0.000000e+00> : vector<16x32xf32>
    %234 = tpu.matmul %232, %233, %cst_67 {dimension_numbers = #tpu.dot_dimension_numbers<[1], [1], [0], [0], [0, 0, 1, 0], [], []>} : vector<16x8xf32>, vector<32x8xf32>, vector<16x32xf32> -> vector<16x32xf32>
    %235 = arith.addf %234, %103 : vector<16x32xf32>
    %cst_68 = arith.constant dense<0xFF800000> : vector<16xf32>
    %236 = vector.multi_reduction <maximumf>, %235, %cst_68 [1] : vector<16x32xf32> to vector<16xf32>
    %237 = vector.shape_cast %236 : vector<16xf32> to vector<16x1xf32>
    %238 = vector.broadcast %237 : vector<16x1xf32> to vector<16x32xf32>
    %239 = arith.subf %235, %238 : vector<16x32xf32>
    %240 = math.exp %239 : vector<16x32xf32>
    %cst_69 = arith.constant dense<0.000000e+00> : vector<16xf32>
    %241 = vector.multi_reduction <add>, %240, %cst_69 [1] : vector<16x32xf32> to vector<16xf32>
    %242 = vector.shape_cast %241 : vector<16xf32> to vector<16x1xf32>
    %243 = tpu.reciprocal %242 {approx = true} : vector<16x1xf32> -> vector<16x1xf32>
    %244 = vector.broadcast %243 : vector<16x1xf32> to vector<16x32xf32>
    %245 = arith.mulf %240, %244 : vector<16x32xf32>
    %246 = vector.extract_strided_slice %215 {offsets = [0, 32], sizes = [32, 32], strides = [1, 1]} : vector<32x128xf32> to vector<32x32xf32>
    %cst_70 = arith.constant dense<0.000000e+00> : vector<16x32xf32>
    %247 = tpu.matmul %245, %246, %cst_70 {dimension_numbers = #tpu.dot_dimension_numbers<[1], [0], [0], [1], [0, 0, 1, 1], [], []>} : vector<16x32xf32>, vector<32x32xf32>, vector<16x32xf32> -> vector<16x32xf32>
    %248 = arith.addf %231, %247 : vector<16x32xf32>
    %249 = vector.extract_strided_slice %208 {offsets = [0, 16], sizes = [16, 8], strides = [1, 1]} : vector<16x32xf32> to vector<16x8xf32>
    %250 = vector.extract_strided_slice %212 {offsets = [0, 16], sizes = [32, 8], strides = [1, 1]} : vector<32x32xf32> to vector<32x8xf32>
    %cst_71 = arith.constant dense<0.000000e+00> : vector<16x32xf32>
    %251 = tpu.matmul %249, %250, %cst_71 {dimension_numbers = #tpu.dot_dimension_numbers<[1], [1], [0], [0], [0, 0, 1, 0], [], []>} : vector<16x8xf32>, vector<32x8xf32>, vector<16x32xf32> -> vector<16x32xf32>
    %252 = arith.addf %251, %103 : vector<16x32xf32>
    %cst_72 = arith.constant dense<0xFF800000> : vector<16xf32>
    %253 = vector.multi_reduction <maximumf>, %252, %cst_72 [1] : vector<16x32xf32> to vector<16xf32>
    %254 = vector.shape_cast %253 : vector<16xf32> to vector<16x1xf32>
    %255 = vector.broadcast %254 : vector<16x1xf32> to vector<16x32xf32>
    %256 = arith.subf %252, %255 : vector<16x32xf32>
    %257 = math.exp %256 : vector<16x32xf32>
    %cst_73 = arith.constant dense<0.000000e+00> : vector<16xf32>
    %258 = vector.multi_reduction <add>, %257, %cst_73 [1] : vector<16x32xf32> to vector<16xf32>
    %259 = vector.shape_cast %258 : vector<16xf32> to vector<16x1xf32>
    %260 = tpu.reciprocal %259 {approx = true} : vector<16x1xf32> -> vector<16x1xf32>
    %261 = vector.broadcast %260 : vector<16x1xf32> to vector<16x32xf32>
    %262 = arith.mulf %257, %261 : vector<16x32xf32>
    %263 = vector.extract_strided_slice %215 {offsets = [0, 64], sizes = [32, 32], strides = [1, 1]} : vector<32x128xf32> to vector<32x32xf32>
    %cst_74 = arith.constant dense<0.000000e+00> : vector<16x32xf32>
    %264 = tpu.matmul %262, %263, %cst_74 {dimension_numbers = #tpu.dot_dimension_numbers<[1], [0], [0], [1], [0, 0, 1, 1], [], []>} : vector<16x32xf32>, vector<32x32xf32>, vector<16x32xf32> -> vector<16x32xf32>
    %265 = arith.addf %248, %264 : vector<16x32xf32>
    %266 = vector.extract_strided_slice %208 {offsets = [0, 24], sizes = [16, 8], strides = [1, 1]} : vector<16x32xf32> to vector<16x8xf32>
    %267 = vector.extract_strided_slice %212 {offsets = [0, 24], sizes = [32, 8], strides = [1, 1]} : vector<32x32xf32> to vector<32x8xf32>
    %cst_75 = arith.constant dense<0.000000e+00> : vector<16x32xf32>
    %268 = tpu.matmul %266, %267, %cst_75 {dimension_numbers = #tpu.dot_dimension_numbers<[1], [1], [0], [0], [0, 0, 1, 0], [], []>} : vector<16x8xf32>, vector<32x8xf32>, vector<16x32xf32> -> vector<16x32xf32>
    %269 = arith.addf %268, %103 : vector<16x32xf32>
    %cst_76 = arith.constant dense<0xFF800000> : vector<16xf32>
    %270 = vector.multi_reduction <maximumf>, %269, %cst_76 [1] : vector<16x32xf32> to vector<16xf32>
    %271 = vector.shape_cast %270 : vector<16xf32> to vector<16x1xf32>
    %272 = vector.broadcast %271 : vector<16x1xf32> to vector<16x32xf32>
    %273 = arith.subf %269, %272 : vector<16x32xf32>
    %274 = math.exp %273 : vector<16x32xf32>
    %cst_77 = arith.constant dense<0.000000e+00> : vector<16xf32>
    %275 = vector.multi_reduction <add>, %274, %cst_77 [1] : vector<16x32xf32> to vector<16xf32>
    %276 = vector.shape_cast %275 : vector<16xf32> to vector<16x1xf32>
    %277 = tpu.reciprocal %276 {approx = true} : vector<16x1xf32> -> vector<16x1xf32>
    %278 = vector.broadcast %277 : vector<16x1xf32> to vector<16x32xf32>
    %279 = arith.mulf %274, %278 : vector<16x32xf32>
    %280 = vector.extract_strided_slice %215 {offsets = [0, 96], sizes = [32, 32], strides = [1, 1]} : vector<32x128xf32> to vector<32x32xf32>
    %cst_78 = arith.constant dense<0.000000e+00> : vector<16x32xf32>
    %281 = tpu.matmul %279, %280, %cst_78 {dimension_numbers = #tpu.dot_dimension_numbers<[1], [0], [0], [1], [0, 0, 1, 1], [], []>} : vector<16x32xf32>, vector<32x32xf32>, vector<16x32xf32> -> vector<16x32xf32>
    %282 = arith.addf %265, %281 : vector<16x32xf32>
    %283 = vector.broadcast %19 : vector<1x32xf32> to vector<16x32xf32>
    %284 = arith.addf %282, %283 : vector<16x32xf32>
    %285 = arith.addf %204, %284 : vector<16x32xf32>
    %cst_79 = arith.constant dense<0.000000e+00> : vector<16xf32>
    %286 = vector.multi_reduction <add>, %285, %cst_79 [1] : vector<16x32xf32> to vector<16xf32>
    %287 = vector.shape_cast %286 : vector<16xf32> to vector<16x1xf32>
    %cst_80 = arith.constant 3.200000e+01 : f32
    %288 = vector.broadcast %cst_80 : f32 to vector<16x1xf32>
    %289 = arith.divf %287, %288 : vector<16x1xf32>
    %290 = vector.broadcast %289 : vector<16x1xf32> to vector<16x32xf32>
    %291 = arith.subf %285, %290 : vector<16x32xf32>
    %292 = arith.mulf %291, %291 : vector<16x32xf32>
    %cst_81 = arith.constant dense<0.000000e+00> : vector<16xf32>
    %293 = vector.multi_reduction <add>, %292, %cst_81 [1] : vector<16x32xf32> to vector<16xf32>
    %294 = vector.shape_cast %293 : vector<16xf32> to vector<16x1xf32>
    %cst_82 = arith.constant 3.200000e+01 : f32
    %295 = vector.broadcast %cst_82 : f32 to vector<16x1xf32>
    %296 = arith.divf %294, %295 : vector<16x1xf32>
    %297 = vector.broadcast %289 : vector<16x1xf32> to vector<16x32xf32>
    %298 = arith.subf %285, %297 : vector<16x32xf32>
    %cst_83 = arith.constant 9.99999974E-6 : f32
    %299 = vector.broadcast %cst_83 : f32 to vector<16x1xf32>
    %300 = arith.addf %296, %299 : vector<16x1xf32>
    %301 = math.rsqrt %300 : vector<16x1xf32>
    %302 = vector.broadcast %301 : vector<16x1xf32> to vector<16x32xf32>
    %303 = arith.mulf %298, %302 : vector<16x32xf32>
    %304 = vector.broadcast %24 : vector<1x32xf32> to vector<16x32xf32>
    %305 = arith.mulf %303, %304 : vector<16x32xf32>
    %306 = vector.broadcast %25 : vector<1x32xf32> to vector<16x32xf32>
    %307 = arith.addf %305, %306 : vector<16x32xf32>
    %cst_84 = arith.constant dense<0.000000e+00> : vector<16x64xf32>
    %308 = tpu.matmul %307, %10, %cst_84 {dimension_numbers = #tpu.dot_dimension_numbers<[1], [0], [0], [1], [0, 0, 1, 1], [], []>} : vector<16x32xf32>, vector<32x64xf32>, vector<16x64xf32> -> vector<16x64xf32>
    %309 = vector.broadcast %20 : vector<1x64xf32> to vector<16x64xf32>
    %310 = arith.addf %308, %309 : vector<16x64xf32>
    %cst_85 = arith.constant 0.000000e+00 : f32
    %311 = vector.broadcast %cst_85 : f32 to vector<16x64xf32>
    %312 = arith.maximumf %310, %311 : vector<16x64xf32>
    %cst_86 = arith.constant dense<0.000000e+00> : vector<16x32xf32>
    %313 = tpu.matmul %312, %5, %cst_86 {dimension_numbers = #tpu.dot_dimension_numbers<[1], [0], [0], [1], [0, 0, 1, 1], [], []>} : vector<16x64xf32>, vector<64x32xf32>, vector<16x32xf32> -> vector<16x32xf32>
    %314 = vector.broadcast %21 : vector<1x32xf32> to vector<16x32xf32>
    %315 = arith.addf %313, %314 : vector<16x32xf32>
    %316 = arith.addf %307, %315 : vector<16x32xf32>
    %cst_87 = arith.constant dense<0.000000e+00> : vector<16xf32>
    %317 = vector.multi_reduction <add>, %316, %cst_87 [1] : vector<16x32xf32> to vector<16xf32>
    %318 = vector.shape_cast %317 : vector<16xf32> to vector<16x1xf32>
    %cst_88 = arith.constant 3.200000e+01 : f32
    %319 = vector.broadcast %cst_88 : f32 to vector<16x1xf32>
    %320 = arith.divf %318, %319 : vector<16x1xf32>
    %321 = vector.broadcast %320 : vector<16x1xf32> to vector<16x32xf32>
    %322 = arith.subf %316, %321 : vector<16x32xf32>
    %323 = arith.mulf %322, %322 : vector<16x32xf32>
    %cst_89 = arith.constant dense<0.000000e+00> : vector<16xf32>
    %324 = vector.multi_reduction <add>, %323, %cst_89 [1] : vector<16x32xf32> to vector<16xf32>
    %325 = vector.shape_cast %324 : vector<16xf32> to vector<16x1xf32>
    %cst_90 = arith.constant 3.200000e+01 : f32
    %326 = vector.broadcast %cst_90 : f32 to vector<16x1xf32>
    %327 = arith.divf %325, %326 : vector<16x1xf32>
    %328 = vector.broadcast %320 : vector<16x1xf32> to vector<16x32xf32>
    %329 = arith.subf %316, %328 : vector<16x32xf32>
    %cst_91 = arith.constant 9.99999974E-6 : f32
    %330 = vector.broadcast %cst_91 : f32 to vector<16x1xf32>
    %331 = arith.addf %327, %330 : vector<16x1xf32>
    %332 = math.rsqrt %331 : vector<16x1xf32>
    %333 = vector.broadcast %332 : vector<16x1xf32> to vector<16x32xf32>
    %334 = arith.mulf %329, %333 : vector<16x32xf32>
    %335 = vector.broadcast %26 : vector<1x32xf32> to vector<16x32xf32>
    %336 = arith.mulf %334, %335 : vector<16x32xf32>
    %337 = vector.broadcast %27 : vector<1x32xf32> to vector<16x32xf32>
    %338 = arith.addf %336, %337 : vector<16x32xf32>
    %c0_92 = arith.constant 0 : index
    %c0_93 = arith.constant 0 : index
    %339 = vector.load %arg8[%c0_92, %c0_93] : memref<16x32xf32, #tpu.memory_space<vmem>>, vector<16x32xf32>
    tpu.vector_store %arg8[%c0_92, %c0_93], %338 {strides = array<i32>} : memref<16x32xf32, #tpu.memory_space<vmem>>, vector<16x32xf32>,
    return
  }
  func.func @transform_0(%arg0: i32) -> (i32, i32) {
    %c0_i32 = arith.constant 0 : i32
    %c0_i32_0 = arith.constant 0 : i32
    %c0_i32_1 = arith.constant 0 : i32
    return %c0_i32, %c0_i32_0 : i32, i32
  }
  func.func @transform_1(%arg0: i32) -> (i32, i32) {
    %c0_i32 = arith.constant 0 : i32
    %c0_i32_0 = arith.constant 0 : i32
    %c0_i32_1 = arith.constant 0 : i32
    return %c0_i32, %c0_i32_0 : i32, i32
  }
  func.func @transform_2(%arg0: i32) -> (i32, i32) {
    %c0_i32 = arith.constant 0 : i32
    %c0_i32_0 = arith.constant 0 : i32
    %c0_i32_1 = arith.constant 0 : i32
    return %c0_i32, %c0_i32_0 : i32, i32
  }
  func.func @transform_3(%arg0: i32) -> (i32, i32) {
    %c0_i32 = arith.constant 0 : i32
    %c0_i32_0 = arith.constant 0 : i32
    %c0_i32_1 = arith.constant 0 : i32
    return %c0_i32, %c0_i32_0 : i32, i32
  }
  func.func @transform_4(%arg0: i32) -> (i32, i32) {
    %c0_i32 = arith.constant 0 : i32
    %c0_i32_0 = arith.constant 0 : i32
    %c0_i32_1 = arith.constant 0 : i32
    return %c0_i32, %c0_i32_0 : i32, i32
  }
  func.func @transform_5(%arg0: i32) -> (i32, i32) {
    %c0_i32 = arith.constant 0 : i32
    %c0_i32_0 = arith.constant 0 : i32
    %c0_i32_1 = arith.constant 0 : i32
    return %c0_i32, %c0_i32_0 : i32, i32
  }
  func.func @transform_6(%arg0: i32) -> (i32, i32) {
    %c0_i32 = arith.constant 0 : i32
    %c0_i32_0 = arith.constant 0 : i32
    %c0_i32_1 = arith.constant 0 : i32
    return %c0_i32, %c0_i32_0 : i32, i32
  }
  func.func @transform_7(%arg0: i32) -> (i32, i32) {
    %c0_i32 = arith.constant 0 : i32
    %c0_i32_0 = arith.constant 0 : i32
    %c0_i32_1 = arith.constant 0 : i32
    return %c0_i32, %c0_i32_0 : i32, i32
  }
}

</mosaic_0001>

<bundles_post_ra>
// kernel: transformer_decoder_layer.1
= control target key start
LH: loop header
LB: loop body
LE: loop exit
PB: predicated region body
PF: predicated region fallthrough
CT: control target
= control target key end

     0   :  { %12 = vsyncpa [#allocation3], 0  ;;  %s4075_s0 = inlined_call_operand.vmem [shape: f32[16,32], index: 0, kind: input, shape index: {}]   ;;  %s4076_s1 = inlined_call_operand.vmem [shape: f32[32,32], index: 1, kind: input, shape index: {}]   ;;  %s4077_s2 = inlined_call_operand.vmem [shape: f32[16,32], index: 2, kind: input, shape index: {}]   ;;  %s4078_s3 = inlined_call_operand.vmem [shape: f32[32,32], index: 3, kind: input, shape index: {}]   ;;  %s4079_s4 = inlined_call_operand.hbm [shape: f32[32,448], index: 4, kind: input, shape index: {}]   ;;  %s4080_s5 = inlined_call_operand.vmem [shape: f32[64,32], index: 5, kind: input, shape index: {}]   ;;  %s4081_s6 = inlined_call_operand.hbm [shape: f32[16,128], index: 6, kind: input, shape index: {}]   ;;  %s4082_s7 = inlined_call_operand.hbm [shape: f32[16,32], index: 7, kind: output, shape index: {}]  }
   0x1   :  { %13 = vsyncpa [#allocation6], 0 }
   0x2   :  { %14 = vsyncpa [#allocation4], 0  ;;  %s3525_s24 = smov [#allocation2]   ;;  %s3453_s28 = scalar_lea.hbm %s4079_s4, 2048 }
   0x3   :  { %s28_s25 = sshll.u32 %s3525_s24, 4  ;;  %p3454_p0 = scmp.ne.s32.totalorder %s4079_s4, %s3453_s28  ;;  %s29_s25 = int_to_ptr.vmem [resolvable:$true] %s28_s25 }
   0x4   :  { %p3457_p1 = scmp.lt.u32.totalorder %s3453_s28, %s4079_s4 }
   0x6   :  { %p3459_p2 = pnand %p3457_p1, %p3454_p0 }
   0x8   :  { %3462 = shalt.err (!%p3459_p2)
}
   0x9   :  { %s3463_s10 = scalar_lea.vmem %s29_s25, 2048  ;;  %p3468_p4 = scmp.lt.s32.totalorder %s29_s25, %s29_s25 }
   0xa   :  { %p3464_p3 = scmp.ne.s32.totalorder %s29_s25, %s3463_s10  ;;  %p3469_p5 = scmp.lt.s32.totalorder %s3463_s10, %s3463_s10 }
   0xc   :  { %p3470_p6 = por %p3469_p5, %p3468_p4 }
   0xe   :  { %p3471_p7 = pnand %p3470_p6, %p3464_p3 }
  0x10   :  { %3474 = shalt.err (!%p3471_p7)
}
  0x11   :  { %s3526_s11 = smov 512   ;;  %s3527_s12 = smov 32  }
  0x12   :  { %34 = dma.hbm_to_vmem [thread:$0]  %s4079_s4, 2048, %s29_s25, [#allocation3], %s3526_s11, %s3526_s11, %s3527_s12  }
  0x13   :  { %s3528_s15 = smov [#allocation5]   ;;  %s3475_s19 = scalar_lea.hbm %s4081_s6, 256 }
  0x14   :  { %s42_s16 = sshll.u32 %s3528_s15, 4  ;;  %p3476_p8 = scmp.ne.s32.totalorder %s4081_s6, %s3475_s19  ;;  %s43_s16 = int_to_ptr.vmem [resolvable:$true] %s42_s16 }
  0x15   :  { %p3479_p9 = scmp.lt.u32.totalorder %s3475_s19, %s4081_s6 }
  0x17   :  { %p3481_p10 = pnand %p3479_p9, %p3476_p8 }
  0x19   :  { %3484 = shalt.err (!%p3481_p10)
}
  0x1a   :  { %s3485_s24 = scalar_lea.vmem %s43_s16, 256  ;;  %p3490_p12 = scmp.lt.s32.totalorder %s43_s16, %s43_s16 }
  0x1b   :  { %p3486_p11 = scmp.ne.s32.totalorder %s43_s16, %s3485_s24  ;;  %p3491_p13 = scmp.lt.s32.totalorder %s3485_s24, %s3485_s24 }
  0x1d   :  { %p3492_p0 = por %p3491_p13, %p3490_p12 }
  0x1f   :  { %p3493_p1 = pnand %p3492_p0, %p3486_p11 }
  0x21   :  { %3496 = shalt.err (!%p3493_p1)
}
  0x22   :  { %s3529_s4 = smov 128   ;;  %s3530_s25 = smov 8  }
  0x23   :  { %48 = dma.hbm_to_vmem [thread:$0]  %s4081_s6, 256, %s43_s16, [#allocation6], %s3529_s4, %s3529_s4, %s3530_s25  }
  0x24   :  { %3519 = dma.done.wait [#allocation3], 2048  }
  0x25   :  { %3520 = vsyncadd [#allocation3], 4294965248 }
  0x26   :  { %3521 = dma.done.wait [#allocation6], 256  }
  0x27   :  { %3522 = vsyncadd [#allocation6], 4294967040  ;;  %v3609_v0 = vld [vmem:[#allocation2 + $0x10] sm:$0xff]  ;;  %v3620_v6 = vld [vmem:[%s4075_s0] sm:$0xff]  ;;  %vm144_vm0 = vcmask 261120   ;;  %v93_v19 = vlaneseq  ;;  %vm317_vm1 = vcmask 64512  }
  0x28   :  { %v3611_v1 = vld [vmem:[#allocation2 + $0x30] sm:$0xff]  ;;  %v3625_v7 = vld [vmem:[%s4077_s2] sm:$0xff]  ;;  %v3633_v10 = vld [vmem:[%s4075_s0 + $0x8] sm:$0xff]  ;;  %s3531_s0 = smov 120   ;;  %s3533_s13 = smov 96   ;;  %vm401_vm5 = vcmask 130048  }
  0x29   :  { %v77_v2 = vld [vmem:[#allocation2 + $0x50] sm:$0xff]  ;;  %v3364_v3 = vpack.i.bf16 %v3611_v1, %v3609_v0  ;;  %v3047_v4 = vpack.c.bf16 %v3611_v1, %v3609_v0  ;;  %v138_v9 = vadd.f32 %v3625_v7, %v3620_v6  ;;  %v3638_v11 = vld [vmem:[%s4077_s2 + $0x8] sm:$0xff]  ;;  %v67_v13 = vld [vmem:[#allocation2] sm:$0xff]  ;;  %v3648_v20 = vshrl.u32 %v93_v19, 7  ;;  %s3532_s2 = smov 88   ;;  %s3534_s14 = smov 72  }
  0x2a   :  { %v81_v5 = vld [vmem:[#allocation2 + $0x70] sm:$0xff]  ;;  %v139_v12 = vadd.f32 %v3638_v11, %v3633_v10  ;;  %v71_v14 = vld [vmem:[#allocation2 + $0x20] sm:$0xff]  ;;  %s3535_s15 = smov 80   ;;  %s3536_s16 = smov 112   ;;  %vm3667_vm2 = vmpackc.low %vm317_vm1, %vm317_vm1  ;;  %v121_v61 = vand.u32 127, %v93_v19  ;;  %vm2466_vm6 = vcmask 523264  }
  0x2b   :  { %v3051_v8 = vpack.c.bf16 %v81_v5, %v77_v2  ;;  %3048 = vmatprep.subr.bf16.mxu1 %v3047_v4  ;;  %2820 = vmatprep.mubr.msk.f32.mxu1 %vm144_vm0, %v138_v9  ;;  %v75_v15 = vld [vmem:[#allocation2 + $0x40] sm:$0xff]  ;;  %v3055_v16 = vpack.c.bf16 %v71_v14, %v67_v13  ;;  %v142_v21 = vsub.s32 0, %v3648_v20  ;;  %s3537_s17 = smov 104   ;;  %v228_v54 = vsub.s32 1, %v3648_v20  ;;  %s3539_s18 = smov 64   ;;  %v88_v1 = vld [vmem:[%s4080_s5 + $0x28] sm:$0xff] }
  0x2c   :  { %3050 = vmatpush3.bf16.msra.mxu1 %v3047_v4  ;;  %v79_v17 = vld [vmem:[#allocation2 + $0x60] sm:$0xff]  ;;  %v95_v60 = vadd.s32 8, %v3648_v20  ;;  %v126_v63 = vand.u32 1, %v121_v61  ;;  %v100_v2 = vand.u32 1, %v3648_v20  ;;  %v3538_v4 = vmov -1e+30  }
  0x2d   :  { %3052 = vmatprep.subr.bf16.mxu1 %v3051_v8  ;;  %v3059_v18 = vpack.c.bf16 %v79_v17, %v75_v15  ;;  %v3651_v22 = vld [vmem:[#allocation5] sm:$0xff] }
  0x2e   :  { %v143_v23 = vrot.slane %v3651_v22, %v142_v21  ;;  %v229_v55 = vrot.slane %v3651_v22, %v228_v54  ;;  %v107_v62 = vand.u32 1, %v95_v60  ;;  %vm134_vm4 = vcmp.eq.s32.totalorder %v100_v2, %v126_v63  ;;  %v87_v0 = vld [vmem:[%s4080_s5 + $0x20] sm:$0xff] }
  0x30   :  { %3054 = vmatpush3.bf16.msra.mxu1 %v3051_v8  ;;  %vm135_vm3 = vcmp.eq.s32.totalorder %v107_v62, %v126_v63  ;;  %v3706_v8 = vsel %vm134_vm4, 0.0, %v3538_v4 }
  0x31   :  { %3056 = vmatprep.subr.bf16.mxu1 %v3055_v16  ;;  %v3704_v5 = vsel %vm135_vm3, 0.0, %v3538_v4 }
  0x33   :  { %2821 = vmatmul.mubr.msk.f32.vlgmr.msra.gmra.mrb[0].mxu1 %vm144_vm0, %v139_v12 }
  0x34   :  { %2831 = vmatprep.mubr.msk.f32.mxu1 %vm144_vm0, %v3620_v6  ;;  %3058 = vmatpush3.bf16.msra.mxu1 %v3055_v16 }
  0x35   :  { %3060 = vmatprep.subr.bf16.mxu1 %v3059_v18 }
  0x38   :  { %3062 = vmatpush3.bf16.msra.mxu1 %v3059_v18 }
  0x3b   :  { %2832 = vmatmul.mubr.msk.f32.vlgmr.msra.gmra.mrb[2].mxu1 %vm144_vm0, %v3633_v10 }
 0x106   :  { %v2822_v24 = vpop.f32.mrb[0].mxu1 }
 0x107   :  { %v223_v25 = vadd.f32 %v2822_v24, %v143_v23  ;;  %v217_v26 = vpop.f32.mrb[1].mxu1 }
 0x108   :  { %v218_v27 = vadd.f32 %v217_v26, %v143_v23 }
 0x10a   :  { %424 = vrot.lane.b32.xlu1 %v218_v27, %s3531_s0  ;;  %2838 = vmatprep.mubr.msk.f32.mxu0 %vm317_vm1, %v218_v27  ;;  %v3259_v28 = vpack.i.bf16 %v223_v25, %v218_v27 }
 0x10c   :  { %3260 = vrot.lane.b32.xlu0 %v3259_v28, %s3532_s2 }
 0x10e   :  { %426 = vrot.lane.b32.xlu1 %v223_v25, %s3531_s0  ;;  %v2833_v29 = vpop.f32.mrb[2].mxu1 }
 0x10f   :  { %v302_v30 = vpop.f32.mrb[3].mxu1  ;;  %v308_v56 = vadd.f32 %v2833_v29, %v229_v55 }
 0x110   :  { %3265 = vrot.lane.b32.xlu0 %v3259_v28, %s3533_s13  ;;  %v303_v57 = vadd.f32 %v302_v30, %v229_v55 }
 0x112   :  { %3275 = vrot.lane.b32.xlu1 %v3259_v28, %s3534_s14  ;;  %v3697_v58 = vpack.i.bf16 %v308_v56, %v303_v57  ;;  %v3699_v59 = vpack.c.bf16 %v308_v56, %v303_v57 }
 0x114   :  { %3270 = vrot.lane.b32.xlu0 %v3259_v28, %s3535_s15 }
 0x116   :  { %709 = vrot.lane.b32.xlu1 %v223_v25, %s3536_s16 }
 0x118   :  { %707 = vrot.lane.b32.xlu0 %v218_v27, %s3536_s16 }
 0x11a   :  { %911 = vrot.lane.b32.xlu1 %v223_v25, %s3537_s17 }
 0x11c   :  { %909 = vrot.lane.b32.xlu0 %v218_v27, %s3537_s17 }
 0x17c   :  { %v425_v31 = vpop.permute.xlu1 %424 }
 0x17d   :  { %2845 = vmatprep.mubr.msk.f32.mxu1 %vm317_vm1, %v425_v31 }
 0x17e   :  { %v3261_v32 = vpop.permute.xlu0 %3260 }
 0x17f   :  { %v3263_v33 = vunpack.i.h.bf16 %v3261_v32  ;;  %v3262_v34 = vunpack.i.l.bf16 %v3261_v32 }
 0x180   :  { %v427_v35 = vpop.permute.xlu1 %426 }
 0x181   :  { %v3069_v37 = vpack.c.bf16 %v3263_v33, %v3262_v34 }
 0x182   :  { %v3266_v38 = vpop.permute.xlu0 %3265 }
 0x183   :  { %v3268_v39 = vunpack.i.h.bf16 %v3266_v38  ;;  %v3267_v40 = vunpack.i.l.bf16 %v3266_v38  ;;  %3071 = vmatprep.subr.msk.bf16.mxu1 %vm3667_vm2, %v3069_v37 }
 0x184   :  { %v3276_v41 = vpop.permute.xlu1 %3275  ;;  %3074 = vmatpush3.bf16.xpose.msk.msra.mxu1 %vm3667_vm2, %v3069_v37 }
 0x185   :  { %v3063_v42 = vpack.c.bf16 %v3268_v39, %v3267_v40  ;;  %v3278_v44 = vunpack.i.h.bf16 %v3276_v41  ;;  %v3277_v45 = vunpack.i.l.bf16 %v3276_v41 }
 0x186   :  { %v3271_v43 = vpop.permute.xlu0 %3270 }
 0x187   :  { %v3273_v46 = vunpack.i.h.bf16 %v3271_v43  ;;  %v3272_v47 = vunpack.i.l.bf16 %v3271_v43  ;;  %3065 = vmatprep.subr.msk.bf16.mxu0 %vm3667_vm2, %v3063_v42  ;;  %v3093_v50 = vpack.c.bf16 %v3278_v44, %v3277_v45 }
 0x188   :  { %3068 = vmatpush3.bf16.xpose.msk.msra.mxu0 %vm3667_vm2, %v3063_v42  ;;  %v710_v51 = vpop.permute.xlu1 %709 }
 0x189   :  { %v3083_v48 = vpack.c.bf16 %v3273_v46, %v3272_v47 }
 0x18a   :  { %v708_v49 = vpop.permute.xlu0 %707 }
 0x18b   :  { %2846 = vmatmul.mubr.msk.f32.vlgmr.msra.gmra.mrb[4].mxu1 %vm317_vm1, %v427_v35  ;;  %3085 = vmatprep.subr.msk.bf16.mxu1 %vm3667_vm2, %v3083_v48 }
 0x18c   :  { %3088 = vmatpush3.bf16.xpose.msk.msra.mxu1 %vm3667_vm2, %v3083_v48  ;;  %2866 = vmatprep.mubr.msk.f32.mxu1 %vm317_vm1, %v708_v49  ;;  %v912_v53 = vpop.permute.xlu1 %911 }
 0x18d   :  { %3095 = vmatprep.subr.msk.bf16.mxu1 %vm3667_vm2, %v3093_v50 }
 0x18e   :  { %v910_v52 = vpop.permute.xlu0 %909 }
 0x18f   :  { %2839 = vmatmul.mubr.msk.f32.vlgmr.msra.gmra.mrb[0].mxu0 %vm317_vm1, %v223_v25 }
 0x193   :  { %2867 = vmatmul.mubr.msk.f32.vlgmr.msra.gmra.mrb[6].mxu1 %vm317_vm1, %v710_v51 }
 0x194   :  { %3098 = vmatpush3.bf16.xpose.msk.msra.mxu1 %vm3667_vm2, %v3093_v50  ;;  %2880 = vmatprep.mubr.msk.f32.mxu1 %vm317_vm1, %v910_v52 }
 0x19b   :  { %2881 = vmatmul.mubr.msk.f32.vlgmr.msra.gmra.mrb[8].mxu1 %vm317_vm1, %v912_v53 }
 0x25e   :  { %v2847_v9 = vpop.f32.mrb[4].mxu1 }
 0x25f   :  { %v512_v12 = vadd.f32 %v2847_v9, %v3704_v5  ;;  %v506_v13 = vpop.f32.mrb[5].mxu1 }
 0x260   :  { %v507_v14 = vadd.f32 %v506_v13, %v3706_v8 }
 0x261   :  { %v518_v15 = vsel %vm401_vm5, %v512_v12, -inf }
 0x262   :  { %519 = vmax.xlane.f32.xlu1 %v518_v15  ;;  %v2840_v16 = vpop.f32.mrb[0].mxu0  ;;  %v515_v17 = vsel %vm401_vm5, %v507_v14, -inf }
 0x263   :  { %516 = vmax.xlane.f32.xlu0 %v515_v17  ;;  %v392_v18 = vpop.f32.mrb[1].mxu0  ;;  %v398_v23 = vadd.f32 %v2840_v16, %v3704_v5 }
 0x264   :  { %v3713_v19 = vadd.f32 %v392_v18, %v3706_v8 }
 0x265   :  { %v405_v30 = vsel %vm401_vm5, %v398_v23, -inf }
 0x266   :  { %v2868_v24 = vpop.f32.mrb[6].mxu1  ;;  %v402_v25 = vsel %vm401_vm5, %v3713_v19, -inf }
 0x267   :  { %v789_v26 = vpop.f32.mrb[7].mxu1  ;;  %403 = vmax.xlane.f32.xlu0 %v402_v25  ;;  %v795_v28 = vadd.f32 %v2868_v24, %v3704_v5 }
 0x268   :  { %v3719_v27 = vadd.f32 %v789_v26, %v3706_v8 }
 0x269   :  { %v801_v32 = vsel %vm401_vm5, %v795_v28, -inf }
 0x26a   :  { %v798_v29 = vsel %vm401_vm5, %v3719_v27, -inf }
 0x26b   :  { %799 = vmax.xlane.f32.xlu1 %v798_v29  ;;  %406 = vmax.xlane.f32.xlu0 %v405_v30 }
 0x26e   :  { %v2882_v31 = vpop.f32.mrb[8].mxu1 }
 0x26f   :  { %v997_v33 = vadd.f32 %v2882_v31, %v3704_v5  ;;  %v991_v34 = vpop.f32.mrb[9].mxu1  ;;  %802 = vmax.xlane.f32.xlu0 %v801_v32 }
 0x270   :  { %v992_v35 = vadd.f32 %v991_v34, %v3706_v8 }
 0x271   :  { %v1003_v37 = vsel %vm401_vm5, %v997_v33, -inf }
 0x272   :  { %v1000_v38 = vsel %vm401_vm5, %v992_v35, -inf }
 0x273   :  { %1001 = vmax.xlane.f32.xlu1 %v1000_v38  ;;  %1004 = vmax.xlane.f32.xlu0 %v1003_v37 }
 0x2ef   :  { %v520_v39 = vpop.xlane.xlu1 %519 }
 0x2f0   :  { %v522_v40 = vsub.f32 %v512_v12, %v520_v39  ;;  %v517_v41 = vpop.xlane.xlu0 %516 }
 0x2f1   :  { %v521_v42 = vsub.f32 %v507_v14, %v517_v41 }
 0x2f2   :  { %v525_v43 = vmul.f32 1.442695, %v522_v40 }
 0x2f3   :  { %v523_v44 = vmul.f32 1.442695, %v521_v42 }
 0x2f4   :  { %3374 = vpow2.f32 %v525_v43  ;;  %v404_v45 = vpop.xlane.xlu0 %403 }
 0x2f5   :  { %3376 = vpow2.f32 %v523_v44 }
 0x2f8   :  { %v407_v46 = vpop.xlane.xlu0 %406  ;;  %v800_v49 = vpop.xlane.xlu1 %799 }
 0x2f9   :  { %v409_v47 = vsub.f32 %v398_v23, %v407_v46  ;;  %v408_v23 = vsub.f32 %v3713_v19, %v404_v45  ;;  %v804_v25 = vsub.f32 %v3719_v27, %v800_v49 }
 0x2fb   :  { %v412_v48 = vmul.f32 1.442695, %v409_v47  ;;  %v410_v24 = vmul.f32 1.442695, %v408_v23  ;;  %v806_v26 = vmul.f32 1.442695, %v804_v25 }
 0x2fc   :  { %v803_v50 = vpop.xlane.xlu0 %802 }
 0x2fd   :  { %v805_v51 = vsub.f32 %v795_v28, %v803_v50  ;;  %3378 = vpow2.f32 %v412_v48 }
 0x2fe   :  { %v3375_v52 = vpop.eup %3374 }
 0x2ff   :  { %v3377_v53 = vpop.eup %3376  ;;  %v808_v55 = vmul.f32 1.442695, %v805_v51  ;;  %v530_v56 = vsel %vm401_vm5, %v3375_v52, 0.0 }
 0x300   :  { %v1002_v57 = vpop.xlane.xlu1 %1001  ;;  %531 = vadd.xlane.f32.xlu0 %v530_v56  ;;  %v1005_v60 = vpop.xlane.xlu0 %1004  ;;  %v527_v61 = vsel %vm401_vm5, %v3377_v53, 0.0 }
 0x301   :  { %3380 = vpow2.f32 %v808_v55  ;;  %v1006_v62 = vsub.f32 %v992_v35, %v1002_v57  ;;  %v1007_v63 = vsub.f32 %v997_v33, %v1005_v60  ;;  %528 = vadd.xlane.f32.xlu1 %v527_v61 }
 0x303   :  { %v1010_v2 = vmul.f32 1.442695, %v1007_v63  ;;  %v1008_v4 = vmul.f32 1.442695, %v1006_v62 }
 0x305   :  { %3382 = vpow2.f32 %v1010_v2 }
 0x306   :  { %3384 = vpow2.f32 %v1008_v4 }
 0x307   :  { %v3732_v9 = vpop.eup %3378  ;;  %3386 = vpow2.f32 %v410_v24 }
 0x308   :  { %v417_v12 = vsel %vm401_vm5, %v3732_v9, 0.0  ;;  %3388 = vpow2.f32 %v806_v26 }
 0x309   :  { %418 = vadd.xlane.f32.xlu0 %v417_v12 }
 0x30b   :  { %v3736_v13 = vpop.eup %3380 }
 0x30c   :  { %v813_v14 = vsel %vm401_vm5, %v3736_v13, 0.0 }
 0x30d   :  { %814 = vadd.xlane.f32.xlu0 %v813_v14  ;;  %v1113_v14 = vsub.s32 2, %v3648_v20 }
 0x30f   :  { %v3740_v15 = vpop.eup %3382 }
 0x310   :  { %v1015_v16 = vsel %vm401_vm5, %v3740_v15, 0.0  ;;  %v3744_v17 = vpop.eup %3384 }
 0x311   :  { %1016 = vadd.xlane.f32.xlu0 %v1015_v16  ;;  %v1012_v18 = vsel %vm401_vm5, %v3744_v17, 0.0  ;;  %v3387_v28 = vpop.eup %3386  ;;  %v1114_v16 = vrot.slane %v3651_v22, %v1113_v14 }
 0x312   :  { %3280 = vrot.lane.b32.xlu1 %v3697_v58, %s3533_s13  ;;  %v414_v29 = vsel %vm401_vm5, %v3387_v28, 0.0  ;;  %v3389_v30 = vpop.eup %3388 }
 0x313   :  { %v810_v31 = vsel %vm401_vm5, %v3389_v30, 0.0 }
 0x315   :  { %1013 = vadd.xlane.f32.xlu0 %v1012_v18 }
 0x32b   :  { %3285 = vrot.lane.b32.xlu0 %v3697_v58, %s3539_s18 }
 0x336   :  { %415 = vadd.xlane.f32.xlu1 %v414_v29  ;;  %v74_v29 = vld [vmem:[#allocation2 + $0x38] sm:$0xff] }
 0x33a   :  { %811 = vadd.xlane.f32.xlu1 %v810_v31 }
 0x34b   :  { %3290 = vrot.lane.b32.xlu1 %v3697_v58, %s3527_s12 }
 0x38d   :  { %v532_v19 = vpop.xlane.xlu0 %531 }
 0x38e   :  { %3390 = vrcp.f32 %v532_v19  ;;  %v529_v27 = vpop.xlane.xlu1 %528 }
 0x38f   :  { %3392 = vrcp.f32 %v529_v27 }
 0x392   :  { %v3281_v32 = vpop.permute.xlu1 %3280 }
 0x393   :  { %v3283_v33 = vunpack.i.h.bf16 %v3281_v32  ;;  %v3282_v34 = vunpack.i.l.bf16 %v3281_v32 }
 0x395   :  { %v3075_v35 = vpack.c.bf16 %v3283_v33, %v3282_v34 }
 0x396   :  { %v419_v37 = vpop.xlane.xlu0 %418 }
 0x397   :  { %3076 = vmatprep.subr.bf16.mxu0 %v3075_v35  ;;  %3394 = vrcp.f32 %v419_v37 }
 0x398   :  { %v3391_v38 = vpop.eup %3390  ;;  %3078 = vmatpush3.bf16.msra.mxu0 %v3075_v35 }
 0x399   :  { %v3393_v39 = vpop.eup %3392  ;;  %3080 = vmatprep.subr.bf16.mxu0 %v3699_v59  ;;  %v536_v41 = vmul.f32 %v3391_v38, %v3375_v52  ;;  %v78_v38 = vld [vmem:[#allocation2 + $0x58] sm:$0xff] }
 0x39a   :  { %v535_v40 = vmul.f32 %v3393_v39, %v3377_v53  ;;  %v815_v42 = vpop.xlane.xlu0 %814  ;;  %v82_v39 = vld [vmem:[#allocation2 + $0x78] sm:$0xff] }
 0x39c   :  { %2852 = vmatprep.mubr.msk.f32.mxu0 %vm401_vm5, %v535_v40  ;;  %v3299_v40 = vpack.i.bf16 %v82_v39, %v78_v38 }
 0x39d   :  { %2853 = vmatmul.mubr.msk.f32.vlgmr.msra.gmra.mrb[2].mxu0 %vm401_vm5, %v536_v41 }
 0x39e   :  { %3082 = vmatpush3.bf16.msra.mxu0 %v3699_v59  ;;  %v1017_v58 = vpop.xlane.xlu0 %1016 }
 0x3a1   :  { %v3395_v51 = vpop.eup %3394 }
 0x3a2   :  { %v1014_v43 = vpop.xlane.xlu0 %1013  ;;  %v423_v56 = vmul.f32 %v3395_v51, %v3732_v9 }
 0x3a6   :  { %v3286_v44 = vpop.permute.xlu0 %3285 }
 0x3a7   :  { %v3288_v45 = vunpack.i.h.bf16 %v3286_v44  ;;  %v3287_v46 = vunpack.i.l.bf16 %v3286_v44  ;;  %v57_v44 = vld [vmem:[%s4076_s1] sm:$0xff] }
 0x3a9   :  { %v3089_v47 = vpack.c.bf16 %v3288_v45, %v3287_v46  ;;  %v63_v45 = vld [vmem:[%s4078_s3] sm:$0xff] }
 0x3aa   :  { %v1245_v46 = vadd.f32 %v63_v45, %v57_v44 }
 0x3ab   :  { %3090 = vmatprep.subr.bf16.mxu0 %v3089_v47 }
 0x3ac   :  { %2909 = vmatprep.mubr.msk.f32.mxu1 %vm144_vm0, %v1245_v46 }
 0x3c3   :  { %v416_v48 = vpop.xlane.xlu1 %415 }
 0x3c4   :  { %3396 = vrcp.f32 %v416_v48  ;;  %v3107_v48 = vpack.c.bf16 %v82_v39, %v78_v38 }
 0x3c7   :  { %v812_v49 = vpop.xlane.xlu1 %811 }
 0x3c8   :  { %3398 = vrcp.f32 %v812_v49 }
 0x3c9   :  { %3400 = vrcp.f32 %v815_v42 }
 0x3ca   :  { %3402 = vrcp.f32 %v1014_v43 }
 0x3cb   :  { %v3291_v50 = vpop.permute.xlu1 %3290  ;;  %3404 = vrcp.f32 %v1017_v58 }
 0x3cc   :  { %v3293_v53 = vunpack.i.h.bf16 %v3291_v50  ;;  %v3292_v55 = vunpack.i.l.bf16 %v3291_v50 }
 0x3ce   :  { %v3397_v52 = vpop.eup %3396  ;;  %v3099_v60 = vpack.c.bf16 %v3293_v53, %v3292_v55 }
 0x3cf   :  { %v422_v59 = vmul.f32 %v3397_v52, %v3387_v28  ;;  %v70_v28 = vld [vmem:[#allocation2 + $0x18] sm:$0xff] }
 0x3d1   :  { %2859 = vmatprep.mubr.msk.f32.mxu0 %vm401_vm5, %v422_v59 }
 0x3d2   :  { %v3399_v57 = vpop.eup %3398  ;;  %2860 = vmatmul.mubr.msk.f32.vlgmr.msra.gmra.mrb[2].mxu0 %vm401_vm5, %v423_v56 }
 0x3d3   :  { %3092 = vmatpush3.bf16.msra.mxu0 %v3089_v47  ;;  %v818_v61 = vmul.f32 %v3399_v57, %v3389_v30  ;;  %v3401_v62 = vpop.eup %3400  ;;  %v3294_v30 = vpack.i.bf16 %v74_v29, %v70_v28  ;;  %v3103_v47 = vpack.c.bf16 %v74_v29, %v70_v28 }
 0x3d4   :  { %3100 = vmatprep.subr.bf16.mxu0 %v3099_v60  ;;  %v3403_v63 = vpop.eup %3402  ;;  %v819_v2 = vmul.f32 %v3401_v62, %v3736_v13  ;;  %v3797_v62 = vld [vmem:[#allocation5 + $0x8] sm:$0xff] }
 0x3d5   :  { %2873 = vmatprep.mubr.msk.f32.mxu0 %vm401_vm5, %v818_v61  ;;  %v1020_v4 = vmul.f32 %v3403_v63, %v3744_v17  ;;  %v3405_v9 = vpop.eup %3404  ;;  %v64_v61 = vld [vmem:[%s4078_s3 + $0x8] sm:$0xff] }
 0x3d6   :  { %v1021_v12 = vmul.f32 %v3405_v9, %v3740_v15 }
 0x3da   :  { %2874 = vmatmul.mubr.msk.f32.vlgmr.msra.gmra.mrb[2].mxu0 %vm401_vm5, %v819_v2  ;;  %v59_v2 = vld [vmem:[%s4076_s1 + $0x10] sm:$0xff] }
 0x3db   :  { %3102 = vmatpush3.bf16.msra.mxu0 %v3099_v60  ;;  %2887 = vmatprep.mubr.msk.f32.mxu0 %vm401_vm5, %v1020_v4  ;;  %v58_v60 = vld [vmem:[%s4076_s1 + $0x8] sm:$0xff]  ;;  %v65_v4 = vld [vmem:[%s4078_s3 + $0x10] sm:$0xff] }
 0x3dc   :  { %3104 = vmatprep.subr.bf16.mxu0 %v3103_v47  ;;  %v1246_v9 = vadd.f32 %v64_v61, %v58_v60 }
 0x3e2   :  { %2888 = vmatmul.mubr.msk.f32.vlgmr.msra.gmra.mrb[2].mxu0 %vm401_vm5, %v1021_v12  ;;  %v1149_v12 = vrot.slane %v3797_v62, %v228_v54 }
 0x3e3   :  { %3106 = vmatpush3.bf16.msra.mxu0 %v3103_v47 }
 0x3e4   :  { %3108 = vmatprep.subr.bf16.mxu0 %v3107_v48 }
 0x3e7   :  { %3110 = vmatpush3.bf16.msra.mxu0 %v3107_v48 }
 0x4b5   :  { %v2889_v18 = vpop.f32.mrb[2].mxu0 }
 0x4b6   :  { %v1116_v13 = vadd.f32 %v2889_v18, %v1114_v16  ;;  %v1100_v23 = vpop.f32.mrb[3].mxu0  ;;  %v60_v18 = vld [vmem:[%s4076_s1 + $0x18] sm:$0xff] }
 0x4b7   :  { %v1115_v17 = vadd.f32 %v1114_v16, %v1100_v23  ;;  %v1247_v16 = vadd.f32 %v65_v4, %v59_v2 }
 0x4b8   :  { %v1118_v24 = vadd.f32 %v1116_v13, %v3633_v10  ;;  %v66_v13 = vld [vmem:[%s4078_s3 + $0x18] sm:$0xff] }
 0x4b9   :  { %v1117_v25 = vadd.f32 %v1115_v17, %v3620_v6  ;;  %v1155_v17 = vrot.slane %v3797_v62, %v1113_v14 }
 0x4ba   :  { %v1122_v26 = vsel %vm144_vm0, %v1118_v24, 0.0 }
 0x4bb   :  { %1123 = vadd.xlane.f32.xlu0 %v1122_v26  ;;  %v1119_v15 = vsel %vm144_vm0, %v1117_v25, 0.0 }
 0x4bc   :  { %1120 = vadd.xlane.f32.xlu1 %v1119_v15 }
 0x4d1   :  { %3295 = vrot.lane.b32.xlu0 %v3294_v30, %s3533_s13 }
 0x548   :  { %v1124_v31 = vpop.xlane.xlu0 %1123 }
 0x549   :  { %v1127_v19 = vmul.f32 0.03125, %v1124_v31  ;;  %v1121_v27 = vpop.xlane.xlu1 %1120 }
 0x54a   :  { %v1126_v32 = vmul.f32 0.03125, %v1121_v27  ;;  %v72_v27 = vld [vmem:[#allocation2 + $0x28] sm:$0xff] }
 0x54b   :  { %v1129_v33 = vsub.f32 %v1118_v24, %v1127_v19  ;;  %v68_v19 = vld [vmem:[#allocation2 + $0x8] sm:$0xff] }
 0x54c   :  { %v1128_v34 = vsub.f32 %v1117_v25, %v1126_v32  ;;  %v3296_v41 = vpop.permute.xlu0 %3295  ;;  %v1248_v25 = vadd.f32 %v66_v13, %v60_v18  ;;  %v76_v32 = vld [vmem:[#allocation2 + $0x48] sm:$0xff] }
 0x54d   :  { %v1131_v10 = vmul.f32 %v1129_v33, %v1129_v33  ;;  %v3298_v42 = vunpack.i.h.bf16 %v3296_v41  ;;  %v3297_v58 = vunpack.i.l.bf16 %v3296_v41 }
 0x54e   :  { %v1130_v35 = vmul.f32 %v1128_v34, %v1128_v34 }
 0x54f   :  { %v1135_v6 = vsel %vm144_vm0, %v1131_v10, 0.0  ;;  %v3111_v43 = vpack.c.bf16 %v3298_v42, %v3297_v58 }
 0x550   :  { %1136 = vadd.xlane.f32.xlu1 %v1135_v6  ;;  %v1132_v37 = vsel %vm144_vm0, %v1130_v35, 0.0 }
 0x551   :  { %3112 = vmatprep.subr.bf16.mxu1 %v3111_v43 }
 0x552   :  { %3114 = vmatpush3.bf16.msra.mxu1 %v3111_v43  ;;  %v1162_v43 = vsub.s32 3, %v3648_v20 }
 0x554   :  { %1133 = vadd.xlane.f32.xlu1 %v1132_v37  ;;  %v1163_v47 = vrot.slane %v3651_v22, %v1162_v43 }
 0x565   :  { %3300 = vrot.lane.b32.xlu1 %v3299_v40, %s3533_s13 }
 0x5dd   :  { %v1137_v49 = vpop.xlane.xlu1 %1136 }
 0x5de   :  { %v1139_v50 = vmul.f32 0.03125, %v1137_v49 }
 0x5e0   :  { %v1141_v51 = vadd.f32 1e-05, %v1139_v50 }
 0x5e1   :  { %v1134_v52 = vpop.xlane.xlu1 %1133 }
 0x5e2   :  { %3406 = vrsqrt.f32 %v1141_v51  ;;  %v1138_v53 = vmul.f32 0.03125, %v1134_v52 }
 0x5e4   :  { %v1140_v55 = vadd.f32 1e-05, %v1138_v53 }
 0x5e5   :  { %v3301_v59 = vpop.permute.xlu1 %3300 }
 0x5e6   :  { %3408 = vrsqrt.f32 %v1140_v55  ;;  %v3303_v56 = vunpack.i.h.bf16 %v3301_v59  ;;  %v3302_v57 = vunpack.i.l.bf16 %v3301_v59 }
 0x5e8   :  { %v3115_v63 = vpack.c.bf16 %v3303_v56, %v3302_v57 }
 0x5ea   :  { %3116 = vmatprep.subr.bf16.mxu1 %v3115_v63 }
 0x5eb   :  { %3118 = vmatpush3.bf16.msra.mxu1 %v3115_v63 }
 0x5ec   :  { %v3407_v23 = vpop.eup %3406 }
 0x5ed   :  { %v1145_v24 = vmul.f32 %v3407_v23, %v1129_v33  ;;  %v3119_v33 = vpack.c.bf16 %v72_v27, %v68_v19 }
 0x5ee   :  { %2910 = vmatmul.mubr.msk.f32.vlgmr.msra.gmra.mrb[10].mxu1 %vm144_vm0, %v1246_v9 }
 0x5ef   :  { %v1151_v54 = vmul.f32 %v1149_v12, %v1145_v24  ;;  %2912 = vmatprep.mubr.msk.f32.mxu1 %vm144_vm0, %v1247_v16  ;;  %3120 = vmatprep.subr.bf16.mxu0 %v3119_v33 }
 0x5f0   :  { %v3409_v26 = vpop.eup %3408 }
 0x5f1   :  { %v1144_v15 = vmul.f32 %v3409_v26, %v1128_v34  ;;  %v3819_v28 = vadd.f32 %v1155_v17, %v1151_v54  ;;  %v80_v34 = vld [vmem:[#allocation2 + $0x68] sm:$0xff] }
 0x5f2   :  { %2913 = vmatmul.mubr.msk.f32.gmra.mrb[12].mxu1 %vm144_vm0, %v1248_v25  ;;  %v3123_v10 = vpack.c.bf16 %v80_v34, %v76_v32 }
 0x5f3   :  { %v1150_v29 = vmul.f32 %v1149_v12, %v1144_v15  ;;  %v1159_v14 = vadd.f32 %v3819_v28, %v3638_v11 }
 0x5f5   :  { %v3822_v30 = vadd.f32 %v1155_v17, %v1150_v29 }
 0x5f7   :  { %v1158_v31 = vadd.f32 %v3822_v30, %v3625_v7  ;;  %v1251_v7 = vsub.s32 4, %v3648_v20 }
 0x5f9   :  { %2898 = vmatprep.mubr.msk.f32.mxu0 %vm144_vm0, %v1158_v31  ;;  %v1252_v11 = vrot.slane %v3651_v22, %v1251_v7 }
 0x5fa   :  { %2899 = vmatmul.mubr.msk.f32.vlgmr.msra.gmra.mrb[4].mxu0 %vm144_vm0, %v1159_v14 }
 0x5fb   :  { %2923 = vmatprep.mubr.msk.f32.mxu0 %vm144_vm0, %v57_v44  ;;  %3122 = vmatpush3.bf16.msra.mxu0 %v3119_v33 }
 0x5fc   :  { %3124 = vmatprep.subr.bf16.mxu0 %v3123_v10 }
 0x5ff   :  { %3126 = vmatpush3.bf16.msra.mxu0 %v3123_v10 }
 0x602   :  { %2924 = vmatmul.mubr.msk.f32.vlgmr.msra.gmra.mrb[6].mxu0 %vm144_vm0, %v58_v60 }
 0x603   :  { %2926 = vmatprep.mubr.msk.f32.mxu0 %vm144_vm0, %v59_v2 }
 0x606   :  { %2927 = vmatmul.mubr.msk.f32.gmra.mrb[8].mxu0 %vm144_vm0, %v60_v18 }
 0x6c1   :  { %v2911_v6 = vpop.f32.mrb[10].mxu1 }
 0x6c2   :  { %v1353_v35 = vadd.f32 %v2911_v6, %v1252_v11  ;;  %v1347_v37 = vpop.f32.mrb[11].mxu1 }
 0x6c3   :  { %v1348_v38 = vadd.f32 %v1347_v37, %v1252_v11 }
 0x6c5   :  { %v2914_v39 = vpop.f32.mrb[12].mxu1  ;;  %v3304_v40 = vpack.i.bf16 %v1353_v35, %v1348_v38  ;;  %v3127_v41 = vpack.c.bf16 %v1353_v35, %v1348_v38  ;;  %v1368_v35 = vsub.s32 5, %v3648_v20 }
 0x6c6   :  { %v1363_v42 = vadd.f32 %v2914_v39, %v1252_v11  ;;  %v1357_v58 = vpop.f32.mrb[13].mxu1 }
 0x6c7   :  { %3305 = vrot.lane.b32.xlu1 %v3304_v40, %s3531_s0  ;;  %3129 = vmatprep.subr.msk.bf16.mxu1 %vm3667_vm2, %v3127_v41  ;;  %v1358_v44 = vadd.f32 %v1357_v58, %v1252_v11  ;;  %v1369_v37 = vrot.slane %v3651_v22, %v1368_v35 }
 0x6c8   :  { %3132 = vmatpush3.bf16.xpose.msk.msra.mxu1 %vm3667_vm2, %v3127_v41 }
 0x6c9   :  { %v3309_v45 = vpack.i.bf16 %v1363_v42, %v1358_v44  ;;  %v3133_v46 = vpack.c.bf16 %v1363_v42, %v1358_v44 }
 0x6cb   :  { %3315 = vrot.lane.b32.xlu1 %v3304_v40, %s3536_s16  ;;  %3310 = vrot.lane.b32.xlu0 %v3309_v45, %s3531_s0 }
 0x6cc   :  { %3135 = vmatprep.subr.msk.bf16.mxu1 %vm3667_vm2, %v3133_v46 }
 0x6cd   :  { %v2900_v48 = vpop.f32.mrb[4].mxu0 }
 0x6ce   :  { %v1242_v49 = vadd.f32 %v2900_v48, %v1163_v47  ;;  %v1236_v50 = vpop.f32.mrb[5].mxu0 }
 0x6cf   :  { %v1237_v51 = vadd.f32 %v1236_v50, %v1163_v47 }
 0x6d0   :  { %1584 = vrot.lane.b32.xlu1 %v1242_v49, %s3531_s0  ;;  %3138 = vmatpush3.bf16.xpose.msk.msra.mxu1 %vm3667_vm2, %v3133_v46 }
 0x6d1   :  { %2937 = vmatprep.mubr.msk.f32.mxu1 %vm317_vm1, %v1237_v51  ;;  %1582 = vrot.lane.b32.xlu0 %v1237_v51, %s3531_s0 }
 0x6d4   :  { %3325 = vrot.lane.b32.xlu1 %v3304_v40, %s3537_s17 }
 0x6d5   :  { %3320 = vrot.lane.b32.xlu0 %v3309_v45, %s3536_s16  ;;  %v2925_v63 = vpop.f32.mrb[6].mxu0 }
 0x6d6   :  { %v1448_v4 = vpop.f32.mrb[7].mxu0  ;;  %v1454_v38 = vadd.f32 %v2925_v63, %v1369_v37 }
 0x6d7   :  { %2938 = vmatmul.mubr.msk.f32.vlgmr.msra.gmra.mrb[14].mxu1 %vm317_vm1, %v1242_v49  ;;  %v1449_v39 = vadd.f32 %v1448_v4, %v1369_v37 }
 0x6d8   :  { %1883 = vrot.lane.b32.xlu1 %v1242_v49, %s3536_s16 }
 0x6d9   :  { %1881 = vrot.lane.b32.xlu0 %v1237_v51, %s3536_s16  ;;  %v2928_v18 = vpop.f32.mrb[8].mxu0  ;;  %v3898_v40 = vpack.i.bf16 %v1454_v38, %v1449_v39  ;;  %v3900_v41 = vpack.c.bf16 %v1454_v38, %v1449_v39 }
 0x6da   :  { %v1458_v13 = vpop.f32.mrb[9].mxu0  ;;  %v1464_v42 = vadd.f32 %v2928_v18, %v1369_v37 }
 0x6db   :  { %v1459_v58 = vadd.f32 %v1458_v13, %v1369_v37 }
 0x6dc   :  { %2097 = vrot.lane.b32.xlu1 %v1237_v51, %s3537_s17 }
 0x6dd   :  { %3330 = vrot.lane.b32.xlu0 %v3309_v45, %s3537_s17  ;;  %v3902_v44 = vpack.i.bf16 %v1464_v42, %v1459_v58  ;;  %v3904_v36 = vpack.c.bf16 %v1464_v42, %v1459_v58 }
 0x6e1   :  { %2099 = vrot.lane.b32.xlu0 %v1242_v49, %s3537_s17 }
 0x739   :  { %v3306_v52 = vpop.permute.xlu1 %3305 }
 0x73a   :  { %v3308_v53 = vunpack.i.h.bf16 %v3306_v52  ;;  %v3307_v55 = vunpack.i.l.bf16 %v3306_v52 }
 0x73c   :  { %v3139_v59 = vpack.c.bf16 %v3308_v53, %v3307_v55 }
 0x73d   :  { %v3311_v56 = vpop.permute.xlu0 %3310  ;;  %v3316_v61 = vpop.permute.xlu1 %3315 }
 0x73e   :  { %3141 = vmatprep.subr.msk.bf16.mxu0 %vm3667_vm2, %v3139_v59  ;;  %v3313_v57 = vunpack.i.h.bf16 %v3311_v56  ;;  %v3312_v60 = vunpack.i.l.bf16 %v3311_v56  ;;  %v3318_v9 = vunpack.i.h.bf16 %v3316_v61  ;;  %v3317_v12 = vunpack.i.l.bf16 %v3316_v61 }
 0x73f   :  { %3144 = vmatpush3.bf16.xpose.msk.msra.mxu0 %vm3667_vm2, %v3139_v59 }
 0x740   :  { %v3145_v2 = vpack.c.bf16 %v3313_v57, %v3312_v60  ;;  %v3167_v23 = vpack.c.bf16 %v3318_v9, %v3317_v12 }
 0x742   :  { %3147 = vmatprep.subr.msk.bf16.mxu0 %vm3667_vm2, %v3145_v2  ;;  %v1585_v24 = vpop.permute.xlu1 %1584 }
 0x743   :  { %v1583_v16 = vpop.permute.xlu0 %1582 }
 0x744   :  { %2948 = vmatprep.mubr.msk.f32.mxu0 %vm317_vm1, %v1583_v16 }
 0x746   :  { %v3326_v29 = vpop.permute.xlu1 %3325 }
 0x747   :  { %v3321_v17 = vpop.permute.xlu0 %3320  ;;  %3150 = vmatpush3.bf16.xpose.msk.msra.mxu0 %vm3667_vm2, %v3145_v2  ;;  %v3328_v31 = vunpack.i.h.bf16 %v3326_v29  ;;  %v3327_v14 = vunpack.i.l.bf16 %v3326_v29 }
 0x748   :  { %3169 = vmatprep.subr.msk.bf16.mxu0 %vm3667_vm2, %v3167_v23  ;;  %v3323_v25 = vunpack.i.h.bf16 %v3321_v17  ;;  %v3322_v54 = vunpack.i.l.bf16 %v3321_v17 }
 0x749   :  { %v3187_v19 = vpack.c.bf16 %v3328_v31, %v3327_v14 }
 0x74a   :  { %v3173_v26 = vpack.c.bf16 %v3323_v25, %v3322_v54  ;;  %v1884_v32 = vpop.permute.xlu1 %1883 }
 0x74b   :  { %v1882_v15 = vpop.permute.xlu0 %1881 }
 0x74e   :  { %2949 = vmatmul.mubr.msk.f32.vlgmr.msra.gmra.mrb[10].mxu0 %vm317_vm1, %v1585_v24  ;;  %v2098_v10 = vpop.permute.xlu1 %2097 }
 0x74f   :  { %3172 = vmatpush3.bf16.xpose.msk.msra.mxu0 %vm3667_vm2, %v3167_v23  ;;  %2981 = vmatprep.mubr.msk.f32.mxu0 %vm317_vm1, %v1882_v15  ;;  %v3331_v27 = vpop.permute.xlu0 %3330 }
 0x750   :  { %3175 = vmatprep.subr.msk.bf16.mxu0 %vm3667_vm2, %v3173_v26  ;;  %v3333_v33 = vunpack.i.h.bf16 %v3331_v27  ;;  %v3332_v34 = vunpack.i.l.bf16 %v3331_v27 }
 0x752   :  { %v3193_v11 = vpack.c.bf16 %v3333_v33, %v3332_v34 }
 0x753   :  { %v2100_v6 = vpop.permute.xlu0 %2099 }
 0x757   :  { %3178 = vmatpush3.bf16.xpose.msk.msra.mxu0 %vm3667_vm2, %v3173_v26 }
 0x758   :  { %3189 = vmatprep.subr.msk.bf16.mxu0 %vm3667_vm2, %v3187_v19 }
 0x75e   :  { %2982 = vmatmul.mubr.msk.f32.vlgmr.msra.gmra.mrb[12].mxu0 %vm317_vm1, %v1884_v32 }
 0x75f   :  { %3192 = vmatpush3.bf16.xpose.msk.msra.mxu0 %vm3667_vm2, %v3187_v19  ;;  %3003 = vmatprep.mubr.msk.f32.mxu0 %vm317_vm1, %v2098_v10 }
 0x760   :  { %3195 = vmatprep.subr.msk.bf16.mxu0 %vm3667_vm2, %v3193_v11 }
 0x767   :  { %3198 = vmatpush3.bf16.xpose.msk.msra.mxu0 %vm3667_vm2, %v3193_v11 }
 0x76e   :  { %3004 = vmatmul.mubr.msk.f32.vlgmr.msra.gmra.mrb[14].mxu0 %vm317_vm1, %v2100_v6 }
 0x7aa   :  { %v2939_v45 = vpop.f32.mrb[14].mxu1 }
 0x7ab   :  { %v1557_v46 = vadd.f32 %v2939_v45, %v3704_v5  ;;  %v1551_v47 = vpop.f32.mrb[15].mxu1 }
 0x7ac   :  { %v1552_v48 = vadd.f32 %v1551_v47, %v3706_v8 }
 0x7ad   :  { %v1563_v22 = vsel %vm144_vm0, %v1557_v46, -inf }
 0x7ae   :  { %1564 = vmax.xlane.f32.xlu1 %v1563_v22  ;;  %v1560_v49 = vsel %vm144_vm0, %v1552_v48, -inf }
 0x7af   :  { %1561 = vmax.xlane.f32.xlu0 %v1560_v49 }
 0x821   :  { %v2950_v50 = vpop.f32.mrb[10].mxu0 }
 0x822   :  { %v1678_v51 = vadd.f32 %v2950_v50, %v3704_v5  ;;  %v1672_v52 = vpop.f32.mrb[11].mxu0 }
 0x823   :  { %v1673_v53 = vadd.f32 %v1672_v52, %v3706_v8 }
 0x824   :  { %v1684_v55 = vsel %vm144_vm0, %v1678_v51, -inf }
 0x825   :  { %1685 = vmax.xlane.f32.xlu0 %v1684_v55  ;;  %v1681_v59 = vsel %vm144_vm0, %v1673_v53, -inf }
 0x826   :  { %1682 = vmax.xlane.f32.xlu1 %v1681_v59 }
 0x831   :  { %v2983_v56 = vpop.f32.mrb[12].mxu0 }
 0x832   :  { %v3915_v57 = vadd.f32 %v2983_v56, %v3704_v5  ;;  %v1971_v60 = vpop.f32.mrb[13].mxu0 }
 0x833   :  { %v3918_v61 = vadd.f32 %v1971_v60, %v3706_v8 }
 0x834   :  { %v1983_v63 = vsel %vm144_vm0, %v3915_v57, -inf }
 0x835   :  { %1984 = vmax.xlane.f32.xlu1 %v1983_v63  ;;  %v1980_v2 = vsel %vm144_vm0, %v3918_v61, -inf }
 0x836   :  { %1981 = vmax.xlane.f32.xlu0 %v1980_v2 }
 0x83b   :  { %v1565_v23 = vpop.xlane.xlu1 %1564 }
 0x83c   :  { %v1562_v17 = vpop.xlane.xlu0 %1561 }
 0x83d   :  { %v1566_v24 = vsub.f32 %v1552_v48, %v1562_v17 }
 0x83f   :  { %v1568_v54 = vmul.f32 1.442695, %v1566_v24 }
 0x841   :  { %v3005_v4 = vpop.f32.mrb[14].mxu0 }
 0x842   :  { %v3925_v9 = vadd.f32 %v3005_v4, %v3704_v5  ;;  %v2187_v12 = vpop.f32.mrb[15].mxu0  ;;  %v1567_v5 = vsub.f32 %v1557_v46, %v1565_v23 }
 0x843   :  { %v2188_v16 = vadd.f32 %v2187_v12, %v3706_v8 }
 0x844   :  { %v2199_v18 = vsel %vm144_vm0, %v3925_v9, -inf  ;;  %v1570_v25 = vmul.f32 1.442695, %v1567_v5 }
 0x845   :  { %2200 = vmax.xlane.f32.xlu1 %v2199_v18  ;;  %v2196_v13 = vsel %vm144_vm0, %v2188_v16, -inf }
 0x846   :  { %2197 = vmax.xlane.f32.xlu0 %v2196_v13  ;;  %3410 = vpow2.f32 %v1570_v25 }
 0x847   :  { %3412 = vpow2.f32 %v1568_v54 }
 0x850   :  { %v3935_v8 = vpop.eup %3410 }
 0x851   :  { %v3937_v26 = vpop.eup %3412  ;;  %v1575_v15 = vsel %vm144_vm0, %v3935_v8, 0.0 }
 0x852   :  { %v1572_v29 = vsel %vm144_vm0, %v3937_v26, 0.0 }
 0x856   :  { %3340 = vrot.lane.b32.xlu1 %v3902_v44, %s3533_s13 }
 0x85c   :  { %3335 = vrot.lane.b32.xlu0 %v3898_v40, %s3533_s13 }
 0x87a   :  { %1576 = vadd.xlane.f32.xlu1 %v1575_v15 }
 0x87b   :  { %1573 = vadd.xlane.f32.xlu0 %v1572_v29 }
 0x8b2   :  { %v1686_v31 = vpop.xlane.xlu0 %1685 }
 0x8b3   :  { %v1688_v14 = vsub.f32 %v1678_v51, %v1686_v31  ;;  %v1683_v19 = vpop.xlane.xlu1 %1682 }
 0x8b4   :  { %v1687_v27 = vsub.f32 %v1673_v53, %v1683_v19 }
 0x8b5   :  { %v1691_v32 = vmul.f32 1.442695, %v1688_v14 }
 0x8b6   :  { %v1689_v33 = vmul.f32 1.442695, %v1687_v27 }
 0x8b7   :  { %3414 = vpow2.f32 %v1691_v32 }
 0x8b8   :  { %3416 = vpow2.f32 %v1689_v33 }
 0x8c1   :  { %v3943_v34 = vpop.eup %3414 }
 0x8c2   :  { %v3417_v10 = vpop.eup %3416  ;;  %v1696_v11 = vsel %vm144_vm0, %v3943_v34, 0.0  ;;  %v1985_v37 = vpop.xlane.xlu1 %1984 }
 0x8c3   :  { %1697 = vadd.xlane.f32.xlu1 %v1696_v11  ;;  %v1693_v6 = vsel %vm144_vm0, %v3417_v10, 0.0  ;;  %v1982_v38 = vpop.xlane.xlu0 %1981  ;;  %v1987_v51 = vsub.f32 %v3915_v57, %v1985_v37 }
 0x8c4   :  { %1694 = vadd.xlane.f32.xlu0 %v1693_v6  ;;  %v1986_v52 = vsub.f32 %v3918_v61, %v1982_v38 }
 0x8c5   :  { %v1990_v53 = vmul.f32 1.442695, %v1987_v51 }
 0x8c6   :  { %v1988_v59 = vmul.f32 1.442695, %v1986_v52 }
 0x8c7   :  { %3418 = vpow2.f32 %v1990_v53 }
 0x8c8   :  { %3420 = vpow2.f32 %v1988_v59  ;;  %v3995_v59 = vld [vmem:[#allocation5] sm:$0xff] }
 0x8d1   :  { %v3956_v2 = vpop.eup %3418 }
 0x8d2   :  { %v2201_v39 = vpop.xlane.xlu1 %2200  ;;  %v3958_v4 = vpop.eup %3420  ;;  %v1995_v57 = vsel %vm144_vm0, %v3956_v2, 0.0 }
 0x8d3   :  { %v2198_v42 = vpop.xlane.xlu0 %2197  ;;  %v2203_v56 = vsub.f32 %v3925_v9, %v2201_v39  ;;  %v1992_v61 = vsel %vm144_vm0, %v3958_v4, 0.0 }
 0x8d4   :  { %3350 = vrot.lane.b32.xlu1 %v3902_v44, %s3539_s18  ;;  %v2202_v55 = vsub.f32 %v2188_v16, %v2198_v42 }
 0x8d5   :  { %v2206_v63 = vmul.f32 1.442695, %v2203_v56 }
 0x8d6   :  { %v3341_v58 = vpop.permute.xlu1 %3340  ;;  %v2204_v60 = vmul.f32 1.442695, %v2202_v55  ;;  %v2315_v55 = vsub.s32 6, %v3648_v20 }
 0x8d7   :  { %v3336_v45 = vpop.permute.xlu0 %3335  ;;  %v3343_v46 = vunpack.i.h.bf16 %v3341_v58  ;;  %v3342_v47 = vunpack.i.l.bf16 %v3341_v58 }
 0x8d8   :  { %v3338_v48 = vunpack.i.h.bf16 %v3336_v45  ;;  %v3337_v22 = vunpack.i.l.bf16 %v3336_v45  ;;  %3422 = vpow2.f32 %v2204_v60  ;;  %v2316_v56 = vrot.slane %v3995_v59, %v2315_v55 }
 0x8d9   :  { %v3155_v50 = vpack.c.bf16 %v3343_v46, %v3342_v47  ;;  %3424 = vpow2.f32 %v2206_v63 }
 0x8da   :  { %v3151_v49 = vpack.c.bf16 %v3338_v48, %v3337_v22  ;;  %3345 = vrot.lane.b32.xlu0 %v3898_v40, %s3539_s18 }
 0x8dc   :  { %3152 = vmatprep.subr.bf16.mxu1 %v3151_v49 }
 0x8dd   :  { %3154 = vmatpush3.bf16.msra.mxu1 %v3151_v49 }
 0x8de   :  { %3156 = vmatprep.subr.bf16.mxu1 %v3155_v50 }
 0x8e1   :  { %3158 = vmatpush3.bf16.msra.mxu1 %v3155_v50 }
 0x8e2   :  { %3160 = vmatprep.subr.bf16.mxu1 %v3900_v41  ;;  %v3962_v12 = vpop.eup %3422 }
 0x8e3   :  { %v3966_v9 = vpop.eup %3424  ;;  %v2208_v16 = vsel %vm144_vm0, %v3962_v12, 0.0 }
 0x8e4   :  { %v2211_v18 = vsel %vm144_vm0, %v3966_v9, 0.0 }
 0x8f8   :  { %1996 = vadd.xlane.f32.xlu1 %v1995_v57 }
 0x8f9   :  { %1993 = vadd.xlane.f32.xlu0 %v1992_v61 }
 0x8fc   :  { %2209 = vadd.xlane.f32.xlu1 %v2208_v16 }
 0x8fd   :  { %2212 = vadd.xlane.f32.xlu0 %v2211_v18 }
 0x907   :  { %v1577_v13 = vpop.xlane.xlu1 %1576 }
 0x908   :  { %v1574_v23 = vpop.xlane.xlu0 %1573 }
 0x909   :  { %3426 = vrcp.f32 %v1574_v23 }
 0x90d   :  { %3355 = vrot.lane.b32.xlu1 %v3898_v40, %s3527_s12 }
 0x913   :  { %3360 = vrot.lane.b32.xlu0 %v3902_v44, %s3527_s12  ;;  %v3427_v24 = vpop.eup %3426 }
 0x914   :  { %v1580_v40 = vmul.f32 %v3427_v24, %v3937_v26 }
 0x950   :  { %v1698_v17 = vpop.xlane.xlu1 %1697 }
 0x951   :  { %3428 = vrcp.f32 %v1698_v17  ;;  %v1695_v5 = vpop.xlane.xlu0 %1694 }
 0x952   :  { %3430 = vrcp.f32 %v1695_v5 }
 0x953   :  { %3432 = vrcp.f32 %v1577_v13 }
 0x954   :  { %v3351_v19 = vpop.permute.xlu1 %3350 }
 0x955   :  { %v3346_v15 = vpop.permute.xlu0 %3345  ;;  %v3353_v32 = vunpack.i.h.bf16 %v3351_v19  ;;  %v3352_v33 = vunpack.i.l.bf16 %v3351_v19  ;;  %v86_v19 = vld [vmem:[%s4080_s5 + $0x18] sm:$0xff] }
 0x956   :  { %v3348_v44 = vunpack.i.h.bf16 %v3346_v15  ;;  %v3347_v14 = vunpack.i.l.bf16 %v3346_v15  ;;  %v3452_v15 = vld [vmem:[#allocation2 + $0x70] sm:$0xff] }
 0x957   :  { %v3183_v26 = vpack.c.bf16 %v3353_v32, %v3352_v33 }
 0x95b   :  { %v3429_v25 = vpop.eup %3428 }
 0x95c   :  { %v3431_v54 = vpop.eup %3430  ;;  %v1702_v31 = vmul.f32 %v3429_v25, %v3943_v34 }
 0x95d   :  { %v1701_v29 = vmul.f32 %v3431_v54, %v3417_v10  ;;  %v3433_v27 = vpop.eup %3432  ;;  %v3179_v10 = vpack.c.bf16 %v3348_v44, %v3347_v14  ;;  %v85_v44 = vld [vmem:[%s4080_s5 + $0x10] sm:$0xff] }
 0x95e   :  { %v1581_v34 = vmul.f32 %v3433_v27, %v3935_v8  ;;  %v3219_v27 = vpack.c.bf16 %v86_v19, %v85_v44 }
 0x95f   :  { %2959 = vmatprep.mubr.msk.f32.mxu1 %vm144_vm0, %v1701_v29 }
 0x960   :  { %2960 = vmatmul.mubr.msk.f32.vlgmr.msra.gmra.mrb[16].mxu1 %vm144_vm0, %v1702_v31  ;;  %v83_v31 = vld [vmem:[%s4080_s5] sm:$0xff] }
 0x961   :  { %3162 = vmatpush3.bf16.msra.mxu1 %v3900_v41  ;;  %2970 = vmatprep.mubr.msk.f32.mxu1 %vm144_vm0, %v1580_v40  ;;  %v84_v40 = vld [vmem:[%s4080_s5 + $0x8] sm:$0xff] }
 0x962   :  { %3164 = vmatprep.subr.bf16.mxu1 %v3904_v36  ;;  %v3215_v14 = vpack.c.bf16 %v84_v40, %v83_v31 }
 0x964   :  { %3216 = vmatprep.subr.bf16.mxu0 %v3215_v14 }
 0x965   :  { %3166 = vmatpush3.bf16.msra.mxu1 %v3904_v36  ;;  %3218 = vmatpush3.bf16.msra.mxu0 %v3215_v14 }
 0x966   :  { %3180 = vmatprep.subr.bf16.mxu1 %v3179_v10  ;;  %3220 = vmatprep.subr.bf16.mxu0 %v3219_v27 }
 0x968   :  { %2971 = vmatmul.mubr.msk.f32.vlgmr.msra.gmra.mrb[16].mxu1 %vm144_vm0, %v1581_v34 }
 0x969   :  { %3182 = vmatpush3.bf16.msra.mxu1 %v3179_v10  ;;  %3222 = vmatpush3.bf16.msra.mxu0 %v3219_v27 }
 0x96a   :  { %3184 = vmatprep.subr.bf16.mxu1 %v3183_v26 }
 0x96d   :  { %3186 = vmatpush3.bf16.msra.mxu1 %v3183_v26 }
 0x985   :  { %v1997_v41 = vpop.xlane.xlu1 %1996 }
 0x986   :  { %3434 = vrcp.f32 %v1997_v41  ;;  %v1994_v11 = vpop.xlane.xlu0 %1993 }
 0x987   :  { %3436 = vrcp.f32 %v1994_v11 }
 0x989   :  { %v2210_v6 = vpop.xlane.xlu1 %2209 }
 0x98a   :  { %3438 = vrcp.f32 %v2210_v6  ;;  %v2213_v37 = vpop.xlane.xlu0 %2212 }
 0x98b   :  { %3440 = vrcp.f32 %v2213_v37 }
 0x98d   :  { %v3356_v38 = vpop.permute.xlu1 %3355 }
 0x98e   :  { %v3358_v39 = vunpack.i.h.bf16 %v3356_v38  ;;  %v3357_v36 = vunpack.i.l.bf16 %v3356_v38  ;;  %v3361_v42 = vpop.permute.xlu0 %3360 }
 0x98f   :  { %v3363_v46 = vunpack.i.h.bf16 %v3361_v42  ;;  %v3362_v47 = vunpack.i.l.bf16 %v3361_v42 }
 0x990   :  { %v3435_v8 = vpop.eup %3434  ;;  %v3199_v58 = vpack.c.bf16 %v3358_v39, %v3357_v36 }
 0x991   :  { %v3437_v45 = vpop.eup %3436  ;;  %v2001_v22 = vmul.f32 %v3435_v8, %v3956_v2  ;;  %v3203_v50 = vpack.c.bf16 %v3363_v46, %v3362_v47 }
 0x992   :  { %3200 = vmatprep.subr.bf16.mxu1 %v3199_v58  ;;  %v2000_v48 = vmul.f32 %v3437_v45, %v3958_v4 }
 0x994   :  { %v3439_v49 = vpop.eup %3438  ;;  %2992 = vmatprep.mubr.msk.f32.mxu1 %vm144_vm0, %v2000_v48 }
 0x995   :  { %2993 = vmatmul.mubr.msk.f32.vlgmr.msra.gmra.mrb[16].mxu1 %vm144_vm0, %v2001_v22  ;;  %v2216_v51 = vmul.f32 %v3439_v49, %v3962_v12  ;;  %v3441_v52 = vpop.eup %3440  ;;  %v2356_v22 = vrot.slane %v3797_v62, %v1251_v7  ;;  %v2361_v7 = vsub.s32 7, %v3648_v20 }
 0x996   :  { %3202 = vmatpush3.bf16.msra.mxu1 %v3199_v58  ;;  %v2217_v53 = vmul.f32 %v3441_v52, %v3966_v9  ;;  %v2350_v58 = vrot.slane %v3797_v62, %v1162_v43  ;;  %v89_v43 = vld [vmem:[%s4080_s5 + $0x30] sm:$0xff] }
 0x997   :  { %3204 = vmatprep.subr.bf16.mxu1 %v3203_v50  ;;  %3014 = vmatprep.mubr.msk.f32.mxu1 %vm144_vm0, %v2216_v51 }
 0x99a   :  { %3206 = vmatpush3.bf16.msra.mxu1 %v3203_v50 }
 0x99d   :  { %3015 = vmatmul.mubr.msk.f32.vlgmr.msra.gmra.mrb[16].mxu1 %vm144_vm0, %v2217_v53  ;;  %v90_v53 = vld [vmem:[%s4080_s5 + $0x38] sm:$0xff]  ;;  %s3540_s5 = smov [#allocation7]  }
 0x99e   :  { %s2595_s24 = sshll.u32 %s3540_s5, 4  ;;  %s2596_s24 = int_to_ptr.vmem [resolvable:$true] %s2595_s24 }
 0x99f   :  { %s3497_s26 = scalar_lea.vmem %s2596_s24, 256  ;;  %p3502_p3 = scmp.lt.s32.totalorder %s2596_s24, %s2596_s24 }
 0x9a0   :  { %p3498_p2 = scmp.ne.s32.totalorder %s2596_s24, %s3497_s26  ;;  %p3503_p4 = scmp.lt.s32.totalorder %s3497_s26, %s3497_s26 }
 0x9a2   :  { %p3504_p5 = por %p3503_p4, %p3502_p3 }
 0x9a4   :  { %p3505_p6 = pnand %p3504_p5, %p3498_p2 }
 0xa70   :  { %v3016_v60 = vpop.f32.mrb[16].mxu1 }
 0xa71   :  { %v2318_v63 = vadd.f32 %v3016_v60, %v2316_v56  ;;  %v2302_v2 = vpop.f32.mrb[17].mxu1  ;;  %v2362_v60 = vrot.slane %v3995_v59, %v2361_v7 }
 0xa72   :  { %v2317_v4 = vadd.f32 %v2316_v56, %v2302_v2  ;;  %v3227_v56 = vpack.c.bf16 %v90_v53, %v89_v43 }
 0xa73   :  { %v2320_v57 = vadd.f32 %v2318_v63, %v3819_v28 }
 0xa74   :  { %v2319_v12 = vadd.f32 %v2317_v4, %v3822_v30  ;;  %v3451_v30 = vld [vmem:[#allocation2 + $0x50] sm:$0xff] }
 0xa75   :  { %v2324_v61 = vsel %vm144_vm0, %v2320_v57, 0.0  ;;  %v3369_v29 = vpack.i.bf16 %v3452_v15, %v3451_v30 }
 0xa76   :  { %2325 = vadd.xlane.f32.xlu0 %v2324_v61  ;;  %v2321_v9 = vsel %vm144_vm0, %v2319_v12, 0.0 }
 0xa77   :  { %2322 = vadd.xlane.f32.xlu1 %v2321_v9  ;;  %v2465_v9 = vrot.slane %v3797_v62, %v142_v21 }
 0xb03   :  { %v2326_v16 = vpop.xlane.xlu0 %2325 }
 0xb04   :  { %v2328_v18 = vmul.f32 0.03125, %v2326_v16  ;;  %v2323_v13 = vpop.xlane.xlu1 %2322 }
 0xb05   :  { %v2327_v23 = vmul.f32 0.03125, %v2323_v13 }
 0xb06   :  { %v2330_v17 = vsub.f32 %v2320_v57, %v2328_v18 }
 0xb07   :  { %v2329_v5 = vsub.f32 %v2319_v12, %v2327_v23 }
 0xb08   :  { %v2332_v24 = vmul.f32 %v2330_v17, %v2330_v17 }
 0xb09   :  { %v2331_v25 = vmul.f32 %v2329_v5, %v2329_v5 }
 0xb0a   :  { %v2336_v54 = vsel %vm144_vm0, %v2332_v24, 0.0 }
 0xb0b   :  { %2337 = vadd.xlane.f32.xlu1 %v2336_v54  ;;  %v2333_v28 = vsel %vm144_vm0, %v2331_v25, 0.0 }
 0xb0c   :  { %2334 = vadd.xlane.f32.xlu0 %v2333_v28 }
 0xb1c   :  { %3370 = vrot.lane.b32.xlu1 %v3369_v29, %s3539_s18 }
 0xb22   :  { %3365 = vrot.lane.b32.xlu0 %v3364_v3, %s3539_s18  ;;  %v3223_v3 = vpack.c.bf16 %v88_v1, %v87_v0 }
 0xb24   :  { %3224 = vmatprep.subr.bf16.mxu0 %v3223_v3 }
 0xb25   :  { %3226 = vmatpush3.bf16.msra.mxu0 %v3223_v3 }
 0xb26   :  { %3228 = vmatprep.subr.bf16.mxu0 %v3227_v56 }
 0xb29   :  { %3230 = vmatpush3.bf16.msra.mxu0 %v3227_v56 }
 0xb98   :  { %v2338_v32 = vpop.xlane.xlu1 %2337 }
 0xb99   :  { %v2340_v33 = vmul.f32 0.03125, %v2338_v32  ;;  %v2335_v10 = vpop.xlane.xlu0 %2334  ;;  %v2579_v32 = vrot.slane %v3797_v62, %v1368_v35 }
 0xb9a   :  { %v2339_v34 = vmul.f32 0.03125, %v2335_v10 }
 0xb9b   :  { %v2342_v26 = vadd.f32 1e-05, %v2340_v33 }
 0xb9c   :  { %v2341_v41 = vadd.f32 1e-05, %v2339_v34  ;;  %v3371_v11 = vpop.permute.xlu1 %3370  ;;  %v2585_v34 = vrot.slane %v3797_v62, %v2315_v55 }
 0xb9d   :  { %3442 = vrsqrt.f32 %v2342_v26  ;;  %v3366_v6 = vpop.permute.xlu0 %3365  ;;  %v3373_v37 = vunpack.i.h.bf16 %v3371_v11  ;;  %v3372_v38 = vunpack.i.l.bf16 %v3371_v11 }
 0xb9e   :  { %3444 = vrsqrt.f32 %v2341_v41  ;;  %v3368_v39 = vunpack.i.h.bf16 %v3366_v6  ;;  %v3367_v36 = vunpack.i.l.bf16 %v3366_v6 }
 0xb9f   :  { %v3211_v8 = vpack.c.bf16 %v3373_v37, %v3372_v38 }
 0xba0   :  { %v3207_v42 = vpack.c.bf16 %v3368_v39, %v3367_v36 }
 0xba2   :  { %3208 = vmatprep.subr.bf16.mxu1 %v3207_v42 }
 0xba3   :  { %3210 = vmatpush3.bf16.msra.mxu1 %v3207_v42 }
 0xba4   :  { %3212 = vmatprep.subr.bf16.mxu1 %v3211_v8 }
 0xba7   :  { %v3443_v45 = vpop.eup %3442  ;;  %3214 = vmatpush3.bf16.msra.mxu1 %v3211_v8 }
 0xba8   :  { %v3445_v46 = vpop.eup %3444  ;;  %v2346_v47 = vmul.f32 %v3443_v45, %v2330_v17 }
 0xba9   :  { %v2345_v48 = vmul.f32 %v3445_v46, %v2329_v5 }
 0xbaa   :  { %v2352_v49 = vmul.f32 %v2350_v58, %v2346_v47 }
 0xbab   :  { %v2351_v50 = vmul.f32 %v2350_v58, %v2345_v48 }
 0xbac   :  { %v2358_v52 = vadd.f32 %v2356_v22, %v2352_v49 }
 0xbad   :  { %v2357_v51 = vadd.f32 %v2356_v22, %v2351_v50 }
 0xbaf   :  { %3025 = vmatprep.mubr.msk.f32.mxu1 %vm144_vm0, %v2357_v51 }
 0xbb0   :  { %3026 = vmatmul.mubr.msk.f32.vlgmr.msra.gmra.mrb[18].mxu1 %vm144_vm0, %v2358_v52 }
 0xc83   :  { %v3027_v63 = vpop.f32.mrb[18].mxu1 }
 0xc84   :  { %v2457_v2 = vadd.f32 %v3027_v63, %v2362_v60  ;;  %v2451_v4 = vpop.f32.mrb[19].mxu1 }
 0xc85   :  { %v2452_v57 = vadd.f32 %v2451_v4, %v2362_v60 }
 0xc86   :  { %v2461_v61 = vmax.f32 %v2457_v2, 0.0 }
 0xc87   :  { %v2460_v12 = vmax.f32 %v2452_v57, 0.0 }
 0xc89   :  { %3044 = vmatprep.mubr.msk.f32.mxu0 %vm2466_vm6, %v2460_v12 }
 0xc8a   :  { %3045 = vmatmul.mubr.msk.f32.vlgmr.msra.gmra.mrb[16].mxu0 %vm2466_vm6, %v2461_v61 }
 0xd5d   :  { %v3046_v16 = vpop.f32.mrb[16].mxu0 }
 0xd5e   :  { %v2545_v18 = vadd.f32 %v3046_v16, %v2465_v9  ;;  %v2539_v13 = vpop.f32.mrb[17].mxu0 }
 0xd5f   :  { %v2540_v23 = vadd.f32 %v2539_v13, %v2465_v9 }
 0xd60   :  { %v2549_v17 = vadd.f32 %v2545_v18, %v2358_v52 }
 0xd61   :  { %v2548_v5 = vadd.f32 %v2540_v23, %v2357_v51 }
 0xd62   :  { %v2553_v59 = vsel %vm144_vm0, %v2549_v17, 0.0 }
 0xd63   :  { %2554 = vadd.xlane.f32.xlu0 %v2553_v59  ;;  %v2550_v24 = vsel %vm144_vm0, %v2548_v5, 0.0 }
 0xd64   :  { %2551 = vadd.xlane.f32.xlu1 %v2550_v24 }
 0xdf0   :  { %v2555_v25 = vpop.xlane.xlu0 %2554 }
 0xdf1   :  { %v2557_v54 = vmul.f32 0.03125, %v2555_v25  ;;  %v2552_v28 = vpop.xlane.xlu1 %2551 }
 0xdf2   :  { %v2556_v30 = vmul.f32 0.03125, %v2552_v28 }
 0xdf3   :  { %v2559_v15 = vsub.f32 %v2549_v17, %v2557_v54 }
 0xdf4   :  { %v2558_v29 = vsub.f32 %v2548_v5, %v2556_v30 }
 0xdf5   :  { %v2561_v31 = vmul.f32 %v2559_v15, %v2559_v15 }
 0xdf6   :  { %v2560_v21 = vmul.f32 %v2558_v29, %v2558_v29 }
 0xdf7   :  { %v2565_v40 = vsel %vm144_vm0, %v2561_v31, 0.0 }
 0xdf8   :  { %2566 = vadd.xlane.f32.xlu1 %v2565_v40  ;;  %v2562_v44 = vsel %vm144_vm0, %v2560_v21, 0.0 }
 0xdf9   :  { %2563 = vadd.xlane.f32.xlu0 %v2562_v44 }
 0xe85   :  { %v2567_v14 = vpop.xlane.xlu1 %2566 }
 0xe86   :  { %v2569_v19 = vmul.f32 0.03125, %v2567_v14  ;;  %v2564_v27 = vpop.xlane.xlu0 %2563 }
 0xe87   :  { %v2568_v0 = vmul.f32 0.03125, %v2564_v27 }
 0xe88   :  { %v2571_v1 = vadd.f32 1e-05, %v2569_v19 }
 0xe89   :  { %v2570_v3 = vadd.f32 1e-05, %v2568_v0 }
 0xe8a   :  { %3446 = vrsqrt.f32 %v2571_v1 }
 0xe8b   :  { %3448 = vrsqrt.f32 %v2570_v3 }
 0xe94   :  { %v3447_v33 = vpop.eup %3446 }
 0xe95   :  { %v3449_v10 = vpop.eup %3448  ;;  %v2575_v26 = vmul.f32 %v3447_v33, %v2559_v15 }
 0xe96   :  { %v2574_v41 = vmul.f32 %v3449_v10, %v2558_v29 }
 0xe97   :  { %v2581_v11 = vmul.f32 %v2579_v32, %v2575_v26 }
 0xe98   :  { %v2580_v6 = vmul.f32 %v2579_v32, %v2574_v41 }
 0xe99   :  { %v2587_v37 = vadd.f32 %v2585_v34, %v2581_v11 }
 0xe9a   :  { %v2586_v38 = vadd.f32 %v2585_v34, %v2580_v6 }
 0xe9b   :  { %2589 = vst.msk [vmem:[#allocation7 + $0x8] sm:$0xff] %vm144_vm0, %v2587_v37 }
 0xe9c   :  { %2588 = vst.msk [vmem:[#allocation7] sm:$0xff] %vm144_vm0, %v2586_v38 }
 0xe9d   :  { %3508 = shalt.err (!%p3505_p6)
}
 0xe9e   :  { %s3509_s29 = scalar_lea.hbm %s4082_s7, 256 }
 0xe9f   :  { %p3510_p7 = scmp.ne.s32.totalorder %s4082_s7, %s3509_s29  ;;  %p3513_p8 = scmp.lt.u32.totalorder %s3509_s29, %s4082_s7 }
 0xea1   :  { %p3515_p9 = pnand %p3513_p8, %p3510_p7 }
 0xea3   :  { %3518 = shalt.err (!%p3515_p9)
}
 0xea4   :  { %2601 = dma.vmem_to_hbm [thread:$0]  %s2596_s24, 256, %s4082_s7, [#allocation4], %s3529_s4, %s3529_s4, %s3530_s25  }
 0xea5   :  { %3523 = dma.done.wait [#allocation4], 256  }
 0xea6   :  { %3524 = vsyncadd [#allocation4], 4294967040 }
 0xea7   :  { %2605 = vsyncpa [#allocation3], 1 }
 0xea8   :  { %2606 = vsyncpa [#allocation6], 1 }
 0xea9   :  { %2607 = vsyncpa [#allocation4], 1 }

</bundles_post_ra>
